<compile_context>
chip_gen: v7x
topology: tpu7x:2x2x1
jax: 0.10.0
libtpu: 0.0.40
codegen_flags: <defaults>
</compile_context>

<pallas_src>
import jax
import jax.numpy as jnp
import numpy as np
from jax import lax
from jax.experimental import pallas as pl
from jax.experimental.pallas import tpu as pltpu

POLICY_DIM = 9          # policy logits occupy output lanes 0..8
VALUE_COL = 9           # pre-tanh value occupies output lane 9
OUT_PAD = 16            # merged / padded output lane count
HIDDEN_PAD = 128        # merged hidden: 64 (policy) + 32 (value), padded to 128
SMALL_BATCH_FASTPATH = 256   # below this, plain XLA beats the pallas launch floor
_HI = lax.Precision.HIGHEST


def _round_up(n, m):
    return ((n + m - 1) // m) * m


def _ppo_kernel(x_ref, w1h_ref, w1l_ref, b1_ref, w2h_ref, w2l_ref, b2_ref, out_ref):
    # x: (TB, 9) bf16 -- board values {-1,0,1} (and zero padding) are exact in bf16.
    x = x_ref[...]

    # Layer 1: W1 = W1_hi + W1_lo (bf16 hi/lo split) -> 2 single-pass bf16 MXU dots
    # with f32 accumulation instead of a multi-pass f32xf32 MXU matmul.
    h = jnp.dot(x, w1h_ref[...], preferred_element_type=jnp.float32)
    h = h + jnp.dot(x, w1l_ref[...], preferred_element_type=jnp.float32)
    h = jnp.maximum(h + b1_ref[...], 0.0)                      # fused ReLU of both heads

    # Layer 2: the f32 hidden is not exact in bf16, so split it hi/lo too and drop
    # only the lo*lo cross term (~2^-17 relative) -> 3 bf16 passes, ~f32 fidelity.
    h_hi = h.astype(jnp.bfloat16)
    h_lo = (h - h_hi.astype(jnp.float32)).astype(jnp.bfloat16)
    z = jnp.dot(h_hi, w2h_ref[...], preferred_element_type=jnp.float32)
    z = z + jnp.dot(h_lo, w2h_ref[...], preferred_element_type=jnp.float32)
    z = z + jnp.dot(h_hi, w2l_ref[...], preferred_element_type=jnp.float32)
    z = z + b2_ref[...]

    lane = lax.broadcasted_iota(jnp.int32, z.shape, 1)
    # tanh only on the value lane (EUP filler under MXU slack); policy lanes raw.
    out_ref[...] = jnp.where(lane == VALUE_COL, jnp.tanh(z), z).astype(out_ref.dtype)


def _conv_feature_map(x_flat, w_conv, b_conv):
    """Conv2d(1,32,3,'same') on the 3x3 board + PyTorch channel-major flatten."""
    B = x_flat.shape[0]
    xr = x_flat.reshape(B, 1, 3, 3).astype(jnp.float32)
    conv = lax.conv_general_dilated(
        xr, w_conv, window_strides=(1, 1), padding="SAME",
        dimension_numbers=("NCHW", "OIHW", "NCHW"), precision=_HI)
    conv = conv + b_conv.reshape(1, 32, 1, 1)
    return conv.reshape(B, -1)                                  # (B, 288), c*9 + p order


def _hi_lo(w):
    """Split an f32 matrix into bf16 hi/lo so that hi + lo ~= w to ~16 mantissa bits."""
    hi = w.astype(jnp.bfloat16)
    lo = (w - hi.astype(jnp.float32)).astype(jnp.bfloat16)
    return hi, lo


def prepare_params(params):
    """One-time fold of conv + Linear1 into a (9,128) affine map, merged block-diagonal
    (128,16) second layer, plus bf16 hi/lo splits for the in-kernel MXU dots."""
    (w_conv, b_conv, w1_pol, b1_pol, w2_pol, b2_pol,
     w1_val, b1_val, w2_val, b2_val) = params

    # Conv features are affine in the raw board: feat(x) = x @ A + f0.
    f0 = _conv_feature_map(jnp.zeros((1, 9), jnp.float32), w_conv, b_conv)   # (1, 288)
    fI = _conv_feature_map(jnp.eye(9, dtype=jnp.float32), w_conv, b_conv)    # (9, 288)
    A = fI - f0                                                              # (9, 288)

    # Fold into the first Linear of each head (precision pinned).
    Wp = jnp.dot(A, w1_pol.T, precision=_HI)                    # (9, 64)
    bp = jnp.dot(f0, w1_pol.T, precision=_HI) + b1_pol[None, :] # (1, 64)
    Wv = jnp.dot(A, w1_val.T, precision=_HI)                    # (9, 32)
    bv = jnp.dot(f0, w1_val.T, precision=_HI) + b1_val[None, :] # (1, 32)

    # Merge heads + pad hidden to 128 lanes.
    W1 = jnp.zeros((9, HIDDEN_PAD), jnp.float32)
    W1 = W1.at[:, :64].set(Wp).at[:, 64:96].set(Wv)
    b1 = jnp.zeros((1, HIDDEN_PAD), jnp.float32)
    b1 = b1.at[:, :64].set(bp).at[:, 64:96].set(bv)

    # Block-diagonal second layer into a single padded 16-lane output.
    W2 = jnp.zeros((HIDDEN_PAD, OUT_PAD), jnp.float32)
    W2 = W2.at[:64, :POLICY_DIM].set(w2_pol.T)                     # policy (64, 9)
    W2 = W2.at[64:96, VALUE_COL:VALUE_COL + 1].set(w2_val.T)       # value  (32, 1)
    b2 = jnp.zeros((1, OUT_PAD), jnp.float32)
    b2 = b2.at[:, :POLICY_DIM].set(b2_pol[None, :])
    b2 = b2.at[:, VALUE_COL].set(b2_val[0])

    W1_hi, W1_lo = _hi_lo(W1)
    W2_hi, W2_lo = _hi_lo(W2)
    return {"W1": W1, "b1": b1, "W2": W2, "b2": b2,
            "W1_hi": W1_hi, "W1_lo": W1_lo, "W2_hi": W2_hi, "W2_lo": W2_lo}


def ppo_cnn_agent_forward(x, prepared, *, use_pallas=None):
    """x: (B, 9) flattened 3x3 board (f32).  Returns (policy (B,9), value (B,1))."""
    W1, b1, W2, b2 = prepared["W1"], prepared["b1"], prepared["W2"], prepared["b2"]
    B = x.shape[0]
    x = x.astype(jnp.float32).reshape(B, 9)
    if use_pallas is None:
        use_pallas = B >= SMALL_BATCH_FASTPATH

    if not use_pallas:
        # Small-batch fast path: folded GEMMs as plain XLA ops (no kernel-launch floor).
        h = jnp.maximum(jnp.dot(x, W1, precision=_HI) + b1, 0.0)
        z = jnp.dot(h, W2, precision=_HI) + b2
        return z[:, :POLICY_DIM], jnp.tanh(z[:, VALUE_COL:VALUE_COL + 1])

    # Batch tiling: TB multiple of 16 (bf16 sublanes), capped at 512 so the grid has
    # >=2 steps (v7x 2-TC sharding + DMA/compute overlap) and per-block VMEM stays
    # in the hundreds of KiB (v7x 64 MiB safe).  Kernel is MXU-bound, so bigger TB
    # buys nothing.
    TB = min(512, max(16, _round_up(-(-B // 2), 16)))
    B_pad = _round_up(B, TB)
    xb = x.astype(jnp.bfloat16)                 # exact for {-1,0,1} boards; halves DMA
    if B_pad != B:
        xb = jnp.pad(xb, ((0, B_pad - B), (0, 0)))

    def full(a):
        return pl.BlockSpec(a.shape, lambda i: (0,) * a.ndim)   # resident weights

    W1h, W1l = prepared["W1_hi"], prepared["W1_lo"]
    W2h, W2l = prepared["W2_hi"], prepared["W2_lo"]

    out = pl.pallas_call(
        _ppo_kernel,
        out_shape=jax.ShapeDtypeStruct((B_pad, OUT_PAD), jnp.float32),
        grid=(B_pad // TB,),
        in_specs=[pl.BlockSpec((TB, 9), lambda i: (i, 0)),
                  full(W1h), full(W1l), full(b1), full(W2h), full(W2l), full(b2)],
        out_specs=pl.BlockSpec((TB, OUT_PAD), lambda i: (i, 0)),
        compiler_params=pltpu.CompilerParams(
            dimension_semantics=("parallel",)),
    )(xb, W1h, W1l, b1, W2h, W2l, b2)

    policy = out[:B, :POLICY_DIM]
    value = out[:B, VALUE_COL:VALUE_COL + 1]
    return policy, value


def init_params(key):
    """Deterministic synthetic params with the shapes from PpoCnnAgent.__init__."""
    ks = jax.random.split(key, 10)

    def u(k, shape, fan_in):
        bound = 1.0 / np.sqrt(fan_in)
        return jax.random.uniform(k, shape, jnp.float32, -bound, bound)

    w_conv = u(ks[0], (32, 1, 3, 3), 9)
    b_conv = u(ks[1], (32,), 9)
    w1_pol = u(ks[2], (64, 288), 288)
    b1_pol = u(ks[3], (64,), 288)
    w2_pol = u(ks[4], (9, 64), 64)
    b2_pol = u(ks[5], (9,), 64)
    w1_val = u(ks[6], (32, 288), 288)
    b1_val = u(ks[7], (32,), 288)
    w2_val = u(ks[8], (1, 32), 32)
    b2_val = u(ks[9], (1,), 32)
    return (w_conv, b_conv, w1_pol, b1_pol, w2_pol, b2_pol,
            w1_val, b1_val, w2_val, b2_val)


def ref_forward(x, params):
    """Pure-JAX reference reproducing the PyTorch forward (NCHW conv + MLP heads)."""
    (w_conv, b_conv, w1_pol, b1_pol, w2_pol, b2_pol,
     w1_val, b1_val, w2_val, b2_val) = params
    feat = _conv_feature_map(x, w_conv, b_conv)                  # (B, 288), c-major
    hp = jax.nn.relu(jnp.dot(feat, w1_pol.T, precision=_HI) + b1_pol)
    pol = jnp.dot(hp, w2_pol.T, precision=_HI) + b2_pol
    hv = jax.nn.relu(jnp.dot(feat, w1_val.T, precision=_HI) + b1_val)
    val = jnp.tanh(jnp.dot(hv, w2_val.T, precision=_HI) + b2_val)
    return pol, val


if __name__ == "__main__":
    key = jax.random.PRNGKey(0)
    k_params, k_big, k_small = jax.random.split(key, 3)
    params = init_params(k_params)
    prepared = prepare_params(params)        # one-time fold, hoisted off forward path

    # Tic-tac-toe boards: entries in {-1, 0, 1} (exactly representable in bf16).
    x_big = jax.random.randint(k_big, (1024, 9), -1, 2).astype(jnp.float32)
    x_small = jax.random.randint(k_small, (2, 9), -1, 2).astype(jnp.float32)

    # Pallas path: grid = 2 steps of TB=512 (shards across v7x's two TensorCores).
    policy, value = ppo_cnn_agent_forward(x_big, prepared, use_pallas=True)
    policy = jax.block_until_ready(policy)
    value = jax.block_until_ready(value)
    pol_ref, val_ref = ref_forward(x_big, params)
    np.testing.assert_allclose(np.asarray(policy), np.asarray(pol_ref),
                               rtol=1e-4, atol=1e-4)
    np.testing.assert_allclose(np.asarray(value), np.asarray(val_ref),
                               rtol=1e-4, atol=1e-4)

    # Small-batch fast path (e.g. online select_move at B=2): plain XLA on the
    # folded weights, avoiding the per-call kernel launch/padding floor.
    pol_s, val_s = ppo_cnn_agent_forward(x_small, prepared)
    pol_s = jax.block_until_ready(pol_s)
    val_s = jax.block_until_ready(val_s)
    pol_ref_s, val_ref_s = ref_forward(x_small, params)
    np.testing.assert_allclose(np.asarray(pol_s), np.asarray(pol_ref_s),
                               rtol=1e-4, atol=1e-4)
    np.testing.assert_allclose(np.asarray(val_s), np.asarray(val_ref_s),
                               rtol=1e-4, atol=1e-4)

    # TODO(synk): predict_probs / select_move (softmax masking + multinomial sampling,
    # host-side numpy/randomness) are inference utilities, not part of forward(); not kernelized.
    print("KERNEL_OK")
</pallas_src>

<mosaic_0001>
module attributes {stable_mosaic.version = 11 : i64} {
  func.func @_ppo_kernel(%arg0: i32, %arg1: memref<512x9xbf16, #tpu.memory_space<vmem>>, %arg2: memref<9x128xbf16, #tpu.memory_space<vmem>>, %arg3: memref<9x128xbf16, #tpu.memory_space<vmem>>, %arg4: memref<1x128xf32, #tpu.memory_space<vmem>>, %arg5: memref<128x16xbf16, #tpu.memory_space<vmem>>, %arg6: memref<128x16xbf16, #tpu.memory_space<vmem>>, %arg7: memref<1x16xf32, #tpu.memory_space<vmem>>, %arg8: memref<512x16xf32, #tpu.memory_space<vmem>>) attributes {dimension_semantics = [#tpu.dimension_semantics<parallel>], iteration_bounds = array<i64: 2>, scalar_prefetch = 0 : i64, scratch_operands = 0 : i64, tpu.core_type = #tpu.core_type<tc>, window_params = [{transform_indices = @transform_0, window_bounds = array<i64: 512, 9>}, {pipeline_mode = #tpu.pipeline_mode<synchronous>, transform_indices = @transform_1, window_bounds = array<i64: 9, 128>}, {pipeline_mode = #tpu.pipeline_mode<synchronous>, transform_indices = @transform_2, window_bounds = array<i64: 9, 128>}, {pipeline_mode = #tpu.pipeline_mode<synchronous>, transform_indices = @transform_3, window_bounds = array<i64: 1, 128>}, {pipeline_mode = #tpu.pipeline_mode<synchronous>, transform_indices = @transform_4, window_bounds = array<i64: 128, 16>}, {pipeline_mode = #tpu.pipeline_mode<synchronous>, transform_indices = @transform_5, window_bounds = array<i64: 128, 16>}, {pipeline_mode = #tpu.pipeline_mode<synchronous>, transform_indices = @transform_6, window_bounds = array<i64: 1, 16>}, {transform_indices = @transform_7, window_bounds = array<i64: 512, 16>}]} {
    %c0 = arith.constant 0 : index
    %c0_0 = arith.constant 0 : index
    %0 = vector.load %arg1[%c0, %c0_0] : memref<512x9xbf16, #tpu.memory_space<vmem>>, vector<512x9xbf16>
    %c0_1 = arith.constant 0 : index
    %c0_2 = arith.constant 0 : index
    %1 = vector.load %arg2[%c0_1, %c0_2] : memref<9x128xbf16, #tpu.memory_space<vmem>>, vector<9x128xbf16>
    %cst = arith.constant dense<0.000000e+00> : vector<512x128xf32>
    %2 = tpu.matmul %0, %1, %cst {dimension_numbers = #tpu.dot_dimension_numbers<[1], [0], [0], [1], [0, 0, 1, 1], [], []>} : vector<512x9xbf16>, vector<9x128xbf16>, vector<512x128xf32> -> vector<512x128xf32>
    %c0_3 = arith.constant 0 : index
    %c0_4 = arith.constant 0 : index
    %3 = vector.load %arg3[%c0_3, %c0_4] : memref<9x128xbf16, #tpu.memory_space<vmem>>, vector<9x128xbf16>
    %cst_5 = arith.constant dense<0.000000e+00> : vector<512x128xf32>
    %4 = tpu.matmul %0, %3, %cst_5 {dimension_numbers = #tpu.dot_dimension_numbers<[1], [0], [0], [1], [0, 0, 1, 1], [], []>} : vector<512x9xbf16>, vector<9x128xbf16>, vector<512x128xf32> -> vector<512x128xf32>
    %5 = arith.addf %2, %4 : vector<512x128xf32>
    %c0_6 = arith.constant 0 : index
    %c0_7 = arith.constant 0 : index
    %6 = vector.load %arg4[%c0_6, %c0_7] : memref<1x128xf32, #tpu.memory_space<vmem>>, vector<1x128xf32>
    %7 = vector.broadcast %6 : vector<1x128xf32> to vector<512x128xf32>
    %8 = arith.addf %5, %7 : vector<512x128xf32>
    %cst_8 = arith.constant 0.000000e+00 : f32
    %9 = vector.broadcast %cst_8 : f32 to vector<512x128xf32>
    %10 = arith.maximumf %8, %9 : vector<512x128xf32>
    %11 = arith.truncf %10 : vector<512x128xf32> to vector<512x128xbf16>
    %12 = arith.extf %11 : vector<512x128xbf16> to vector<512x128xf32>
    %13 = arith.subf %10, %12 : vector<512x128xf32>
    %14 = arith.truncf %13 : vector<512x128xf32> to vector<512x128xbf16>
    %c0_9 = arith.constant 0 : index
    %c0_10 = arith.constant 0 : index
    %15 = vector.load %arg5[%c0_9, %c0_10] : memref<128x16xbf16, #tpu.memory_space<vmem>>, vector<128x16xbf16>
    %cst_11 = arith.constant dense<0.000000e+00> : vector<512x16xf32>
    %16 = tpu.matmul %11, %15, %cst_11 {dimension_numbers = #tpu.dot_dimension_numbers<[1], [0], [0], [1], [0, 0, 1, 1], [], []>} : vector<512x128xbf16>, vector<128x16xbf16>, vector<512x16xf32> -> vector<512x16xf32>
    %c0_12 = arith.constant 0 : index
    %c0_13 = arith.constant 0 : index
    %17 = vector.load %arg5[%c0_12, %c0_13] : memref<128x16xbf16, #tpu.memory_space<vmem>>, vector<128x16xbf16>
    %cst_14 = arith.constant dense<0.000000e+00> : vector<512x16xf32>
    %18 = tpu.matmul %14, %17, %cst_14 {dimension_numbers = #tpu.dot_dimension_numbers<[1], [0], [0], [1], [0, 0, 1, 1], [], []>} : vector<512x128xbf16>, vector<128x16xbf16>, vector<512x16xf32> -> vector<512x16xf32>
    %19 = arith.addf %16, %18 : vector<512x16xf32>
    %c0_15 = arith.constant 0 : index
    %c0_16 = arith.constant 0 : index
    %20 = vector.load %arg6[%c0_15, %c0_16] : memref<128x16xbf16, #tpu.memory_space<vmem>>, vector<128x16xbf16>
    %cst_17 = arith.constant dense<0.000000e+00> : vector<512x16xf32>
    %21 = tpu.matmul %11, %20, %cst_17 {dimension_numbers = #tpu.dot_dimension_numbers<[1], [0], [0], [1], [0, 0, 1, 1], [], []>} : vector<512x128xbf16>, vector<128x16xbf16>, vector<512x16xf32> -> vector<512x16xf32>
    %22 = arith.addf %19, %21 : vector<512x16xf32>
    %c0_18 = arith.constant 0 : index
    %c0_19 = arith.constant 0 : index
    %23 = vector.load %arg7[%c0_18, %c0_19] : memref<1x16xf32, #tpu.memory_space<vmem>>, vector<1x16xf32>
    %24 = vector.broadcast %23 : vector<1x16xf32> to vector<512x16xf32>
    %25 = arith.addf %22, %24 : vector<512x16xf32>
    %26 = tpu.iota {dimensions = array<i32: 1>} : vector<512x16xi32>
    %c9_i32 = arith.constant 9 : i32
    %27 = vector.broadcast %c9_i32 : i32 to vector<512x16xi32>
    %28 = arith.cmpi eq, %26, %27 : vector<512x16xi32>
    %29 = math.tanh %25 : vector<512x16xf32>
    %30 = arith.select %28, %29, %25 : vector<512x16xi1>, vector<512x16xf32>
    %c0_20 = arith.constant 0 : index
    %c0_21 = arith.constant 0 : index
    %31 = vector.load %arg8[%c0_20, %c0_21] : memref<512x16xf32, #tpu.memory_space<vmem>>, vector<512x16xf32>
    tpu.vector_store %arg8[%c0_20, %c0_21], %30 {strides = array<i32>} : memref<512x16xf32, #tpu.memory_space<vmem>>, vector<512x16xf32>,
    return
  }
  func.func @transform_0(%arg0: i32) -> (i32, i32) {
    %c0_i32 = arith.constant 0 : i32
    %c0_i32_0 = arith.constant 0 : i32
    return %arg0, %c0_i32 : i32, i32
  }
  func.func @transform_1(%arg0: i32) -> (i32, i32) {
    %c0_i32 = arith.constant 0 : i32
    %c0_i32_0 = arith.constant 0 : i32
    %c0_i32_1 = arith.constant 0 : i32
    return %c0_i32, %c0_i32_0 : i32, i32
  }
  func.func @transform_2(%arg0: i32) -> (i32, i32) {
    %c0_i32 = arith.constant 0 : i32
    %c0_i32_0 = arith.constant 0 : i32
    %c0_i32_1 = arith.constant 0 : i32
    return %c0_i32, %c0_i32_0 : i32, i32
  }
  func.func @transform_3(%arg0: i32) -> (i32, i32) {
    %c0_i32 = arith.constant 0 : i32
    %c0_i32_0 = arith.constant 0 : i32
    %c0_i32_1 = arith.constant 0 : i32
    return %c0_i32, %c0_i32_0 : i32, i32
  }
  func.func @transform_4(%arg0: i32) -> (i32, i32) {
    %c0_i32 = arith.constant 0 : i32
    %c0_i32_0 = arith.constant 0 : i32
    %c0_i32_1 = arith.constant 0 : i32
    return %c0_i32, %c0_i32_0 : i32, i32
  }
  func.func @transform_5(%arg0: i32) -> (i32, i32) {
    %c0_i32 = arith.constant 0 : i32
    %c0_i32_0 = arith.constant 0 : i32
    %c0_i32_1 = arith.constant 0 : i32
    return %c0_i32, %c0_i32_0 : i32, i32
  }
  func.func @transform_6(%arg0: i32) -> (i32, i32) {
    %c0_i32 = arith.constant 0 : i32
    %c0_i32_0 = arith.constant 0 : i32
    %c0_i32_1 = arith.constant 0 : i32
    return %c0_i32, %c0_i32_0 : i32, i32
  }
  func.func @transform_7(%arg0: i32) -> (i32, i32) {
    %c0_i32 = arith.constant 0 : i32
    %c0_i32_0 = arith.constant 0 : i32
    return %arg0, %c0_i32 : i32, i32
  }
}

</mosaic_0001>

<bundles_post_ra>
// kernel: tpu_custom_call.1
= control target key start
LH: loop header
LB: loop body
LE: loop exit
PB: predicated region body
PF: predicated region fallthrough
CT: control target
= control target key end

     0   :  { %s4044_s24 = smov 0   ;;  %s5108_s0 = inlined_call_operand.vmem [shape: bf16[1024,9], index: 0, kind: input, shape index: {}]   ;;  %s5109_s1 = inlined_call_operand.vmem [shape: bf16[9,128], index: 1, kind: input, shape index: {}]   ;;  %s5110_s2 = inlined_call_operand.vmem [shape: bf16[9,128], index: 2, kind: input, shape index: {}]   ;;  %s5111_s3 = inlined_call_operand.vmem [shape: f32[1,128], index: 3, kind: input, shape index: {}]   ;;  %s5112_s4 = inlined_call_operand.vmem [shape: bf16[128,16], index: 4, kind: input, shape index: {}]   ;;  %s5113_s5 = inlined_call_operand.vmem [shape: bf16[128,16], index: 5, kind: input, shape index: {}]   ;;  %s5114_s6 = inlined_call_operand.vmem [shape: f32[1,16], index: 6, kind: input, shape index: {}]   ;;  %s5115_s7 = inlined_call_operand.vmem [shape: f32[1024,16], index: 7, kind: output, shape index: {}]  }
   0x1 LB: > { %s2915_s25 = sadd.s32 4294967295, %s4001_s24   ;;  %p2919_p0 = scmp.ge.s32.totalorder %s4001_s24, 1  ;;  %s4001_s24 = sphi %s4044_s24, %s17_s24  }
   0x2   : > { %p238_p1 = scmp.lt.s32.totalorder %s4001_s24, 3 }
   0x4   : > { %p239_p2 = pnand %p2919_p0, %p238_p1 }
   0x5   : > { %v3817_v0 = vld [vmem:[%s5110_s2] sm:$0x1f] (!%p239_p2)   ;;  %vm613_vm0 = vcmask (!%p239_p2), 1043456   ;;  %vm614_vm1 = vcmask (!%p239_p2), 1044480   ;;  %s2920_s30 = sshll.u32 (!%p239_p2), %s2915_s25, 6  ;;  %v4003_v2 = vmov (!%p239_p2), 65535  }
   0x6   : > { %242 = sbr.rel (%p239_p2) target bundleno = 980 (0x3d4), region = 48  ;;  %v3818_v1 = vld [vmem:[%s5109_s1] sm:$0x1f] (!%p239_p2)   ;;  %v615_v3 = vsel (!%p239_p2), %vm613_vm0, 4294967295, %v4003_v2  ;;  %p271_p3 = scmp.lt.s32.totalorder (!%p239_p2), %s2920_s30, 127  ;;  %vm516_vm2 = vcmask (!%p239_p2), 72704  }
   0x7   : > { %v616_v4 = vsel (!%p239_p2), %vm614_vm1, %v615_v3, 0  ;;  %v4229_v39 = vld [vmem:[%s5112_s4] sm:$0xff] (!%p239_p2)   ;;  %v4237_v40 = vld [vmem:[%s5112_s4 + $0x8] sm:$0xff] (!%p239_p2)   ;;  %v4245_v41 = vld [vmem:[%s5112_s4 + $0x10] sm:$0xff] (!%p239_p2)   ;;  %vm2794_vm4 = vcmask (!%p239_p2), 130048  }
   0x8   : > { %v618_v5 = vand.u32 (!%p239_p2), %v3817_v0, %v616_v4  ;;  %v915_v6 = vand.u32 (!%p239_p2), %v3818_v1, %v616_v4  ;;  %3600 = vmatprep.subr.bf16.mxu1 (!%p239_p2), %v4229_v39  ;;  %v4258_v42 = vld [vmem:[%s5112_s4 + $0x18] sm:$0xff] (!%p239_p2)   ;;  %v4311_v43 = vld [vmem:[%s5112_s4 + $0x20] sm:$0xff] (!%p239_p2)   ;;  %v4320_v44 = vld [vmem:[%s5112_s4 + $0x28] sm:$0xff] (!%p239_p2)  }
   0x9   : > { %3608 = vmatpush3.bf16.msra.mxu1 (!%p239_p2), %v4229_v39  ;;  %v4331_v45 = vld [vmem:[%s5112_s4 + $0x30] sm:$0xff] (!%p239_p2)   ;;  %v4341_v46 = vld [vmem:[%s5112_s4 + $0x38] sm:$0xff] (!%p239_p2)   ;;  %v4366_v47 = vld [vmem:[%s5111_s3] ss:$0 sm:$0xff] (!%p239_p2) }
   0xa   : > { %3228 = vmatprep.subr.bf16.mxu0 (!%p239_p2), %v618_v5  ;;  %3601 = vmatprep.subr.bf16.mxu1 (!%p239_p2), %v4237_v40 }
   0xb   : > { %3229 = vmatpush3.bf16.msra.mxu0 (!%p239_p2), %v618_v5 }
   0xc   : > { %3294 = vmatprep.subr.bf16.mxu0 (!%p239_p2), %v915_v6 }
   0xd   : > { %s5117_s30 = smov (!%p271_p3, %s2920_s30), 127  ;;  %3609 = vmatpush3.bf16.msra.mxu1 %v4237_v40 }
   0xe   : > { %s2921_s8 = sshll.u32 %s5117_s30, 2  ;;  %3602 = vmatprep.subr.bf16.mxu1 %v4245_v41  ;;  %s2923_s28 = sshll.u32 %s5117_s30, 3 }
   0xf   : > { %s4064_s11 = scalar_lea.vmem %s5108_s0, %s2921_s8  ;;  %s4762_s9 = scalar_lea.vmem %s5115_s7, %s2923_s28 }
  0x10   : > { %v4067_v7 = vld [vmem:[%s4064_s11] sm:$0xff]   ;;  %v4070_v8 = vld [vmem:[%s4064_s11 + $0x8] sm:$0xff]   ;;  %v4075_v9 = vld [vmem:[%s4064_s11 + $0x10] sm:$0xff]  }
  0x11   : > { %3230 = vmatprep.mubr.msk.bf16.mxu0 %vm516_vm2, %v4067_v7  ;;  %v4082_v10 = vld [vmem:[%s4064_s11 + $0x18] sm:$0xff]   ;;  %v4085_v11 = vld [vmem:[%s4064_s11 + $0x20] sm:$0xff]   ;;  %v4092_v12 = vld [vmem:[%s4064_s11 + $0x28] sm:$0xff]   ;;  %3610 = vmatpush3.bf16.msra.mxu1 %v4245_v41 }
  0x12   : > { %3231 = vmatmul.mubr.msk.bf16.vlgmr.msra.gmra.mrb[0].mxu0 %vm516_vm2, %v4070_v8  ;;  %v4095_v13 = vld [vmem:[%s4064_s11 + $0x30] sm:$0xff]   ;;  %v4102_v14 = vld [vmem:[%s4064_s11 + $0x38] sm:$0xff]   ;;  %v4105_v15 = vld [vmem:[%s4064_s11 + $0x40] sm:$0xff]   ;;  %3603 = vmatprep.subr.bf16.mxu1 %v4258_v42 }
  0x13   : > { %3295 = vmatpush3.bf16.msra.mxu0 %v915_v6  ;;  %3234 = vmatprep.mubr.msk.bf16.mxu0 %vm516_vm2, %v4075_v9  ;;  %v4112_v16 = vld [vmem:[%s4064_s11 + $0x48] sm:$0xff]   ;;  %v4115_v17 = vld [vmem:[%s4064_s11 + $0x50] sm:$0xff]   ;;  %v4122_v18 = vld [vmem:[%s4064_s11 + $0x58] sm:$0xff]  }
  0x14   : > { %v4125_v19 = vld [vmem:[%s4064_s11 + $0x60] sm:$0xff]   ;;  %v4132_v20 = vld [vmem:[%s4064_s11 + $0x68] sm:$0xff]   ;;  %v4135_v21 = vld [vmem:[%s4064_s11 + $0x70] sm:$0xff]   ;;  %3360 = vmatprep.subr.bf16.mxu0 %v4229_v39 }
  0x15   : > { %v4142_v22 = vld [vmem:[%s4064_s11 + $0x78] sm:$0xff]   ;;  %v4145_v23 = vld [vmem:[%s4064_s11 + $0x80] sm:$0xff]   ;;  %v4152_v24 = vld [vmem:[%s4064_s11 + $0x88] sm:$0xff]   ;;  %3611 = vmatpush3.bf16.msra.mxu1 %v4258_v42 }
  0x16   : > { %v4155_v25 = vld [vmem:[%s4064_s11 + $0x90] sm:$0xff]   ;;  %v4162_v26 = vld [vmem:[%s4064_s11 + $0x98] sm:$0xff]   ;;  %v4165_v27 = vld [vmem:[%s4064_s11 + $0xa0] sm:$0xff]   ;;  %3604 = vmatprep.subr.bf16.mxu1 %v4311_v43 }
  0x17   : > { %v4172_v28 = vld [vmem:[%s4064_s11 + $0xa8] sm:$0xff]   ;;  %v4175_v29 = vld [vmem:[%s4064_s11 + $0xb0] sm:$0xff]   ;;  %v4182_v30 = vld [vmem:[%s4064_s11 + $0xb8] sm:$0xff]  }
  0x18   : > { %v4185_v31 = vld [vmem:[%s4064_s11 + $0xc0] sm:$0xff]   ;;  %v4192_v32 = vld [vmem:[%s4064_s11 + $0xc8] sm:$0xff]   ;;  %v4195_v33 = vld [vmem:[%s4064_s11 + $0xd0] sm:$0xff]  }
  0x19   : > { %v4202_v34 = vld [vmem:[%s4064_s11 + $0xd8] sm:$0xff]   ;;  %v4205_v35 = vld [vmem:[%s4064_s11 + $0xe0] sm:$0xff]   ;;  %v4212_v36 = vld [vmem:[%s4064_s11 + $0xe8] sm:$0xff]   ;;  %3612 = vmatpush3.bf16.msra.mxu1 %v4311_v43 }
  0x1a   : > { %3235 = vmatmul.mubr.msk.bf16.gmra.mrb[4].mxu0 %vm516_vm2, %v4082_v10  ;;  %v4215_v37 = vld [vmem:[%s4064_s11 + $0xf0] sm:$0xff]   ;;  %v4222_v38 = vld [vmem:[%s4064_s11 + $0xf8] sm:$0xff]   ;;  %3605 = vmatprep.subr.bf16.mxu1 %v4320_v44 }
  0x1b   : > { %3238 = vmatprep.mubr.msk.bf16.mxu0 %vm516_vm2, %v4085_v11 }
  0x1d   : > { %3613 = vmatpush3.bf16.msra.mxu1 %v4320_v44 }
  0x1e   : > { %3606 = vmatprep.subr.bf16.mxu1 %v4331_v45 }
  0x21   : > { %3614 = vmatpush3.bf16.msra.mxu1 %v4331_v45 }
  0x22   : > { %3239 = vmatmul.mubr.msk.bf16.gmra.mrb[8].mxu0 %vm516_vm2, %v4092_v12  ;;  %3607 = vmatprep.subr.bf16.mxu1 %v4341_v46 }
  0x23   : > { %3242 = vmatprep.mubr.msk.bf16.mxu0 %vm516_vm2, %v4095_v13 }
  0x25   : > { %3615 = vmatpush3.bf16.msra.mxu1 %v4341_v46 }
  0x26   : > { %3440 = vmatprep.subr.bf16.mxu1 %v4229_v39 }
  0x2a   : > { %3243 = vmatmul.mubr.msk.bf16.gmra.mrb[12].mxu0 %vm516_vm2, %v4102_v14 }
  0x2b   : > { %3246 = vmatprep.mubr.msk.bf16.mxu0 %vm516_vm2, %v4105_v15 }
  0x32   : > { %3247 = vmatmul.mubr.msk.bf16.gmra.mrb[16].mxu0 %vm516_vm2, %v4112_v16 }
  0x33   : > { %3250 = vmatprep.mubr.msk.bf16.mxu0 %vm516_vm2, %v4115_v17 }
  0x3a   : > { %3251 = vmatmul.mubr.msk.bf16.gmra.mrb[20].mxu0 %vm516_vm2, %v4122_v18 }
  0x3b   : > { %3254 = vmatprep.mubr.msk.bf16.mxu0 %vm516_vm2, %v4125_v19 }
  0x42   : > { %3255 = vmatmul.mubr.msk.bf16.gmra.mrb[24].mxu0 %vm516_vm2, %v4132_v20 }
  0x43   : > { %3258 = vmatprep.mubr.msk.bf16.mxu0 %vm516_vm2, %v4135_v21 }
  0x4a   : > { %3259 = vmatmul.mubr.msk.bf16.gmra.mrb[28].mxu0 %vm516_vm2, %v4142_v22 }
  0x4b   : > { %3262 = vmatprep.mubr.msk.bf16.mxu0 %vm516_vm2, %v4145_v23 }
  0x52   : > { %3263 = vmatmul.mubr.msk.bf16.gmra.mrb[32].mxu0 %vm516_vm2, %v4152_v24 }
  0x53   : > { %3266 = vmatprep.mubr.msk.bf16.mxu0 %vm516_vm2, %v4155_v25 }
  0x5a   : > { %3267 = vmatmul.mubr.msk.bf16.gmra.mrb[36].mxu0 %vm516_vm2, %v4162_v26 }
  0x5b   : > { %3270 = vmatprep.mubr.msk.bf16.mxu0 %vm516_vm2, %v4165_v27 }
  0x62   : > { %3271 = vmatmul.mubr.msk.bf16.gmra.mrb[40].mxu0 %vm516_vm2, %v4172_v28 }
  0x63   : > { %3274 = vmatprep.mubr.msk.bf16.mxu0 %vm516_vm2, %v4175_v29 }
  0x6a   : > { %3275 = vmatmul.mubr.msk.bf16.gmra.mrb[44].mxu0 %vm516_vm2, %v4182_v30 }
  0x6b   : > { %3278 = vmatprep.mubr.msk.bf16.mxu0 %vm516_vm2, %v4185_v31 }
  0x72   : > { %3279 = vmatmul.mubr.msk.bf16.gmra.mrb[48].mxu0 %vm516_vm2, %v4192_v32 }
  0x73   : > { %3282 = vmatprep.mubr.msk.bf16.mxu0 %vm516_vm2, %v4195_v33 }
  0x7a   : > { %3283 = vmatmul.mubr.msk.bf16.gmra.mrb[52].mxu0 %vm516_vm2, %v4202_v34 }
  0x7b   : > { %3286 = vmatprep.mubr.msk.bf16.mxu0 %vm516_vm2, %v4205_v35 }
  0x82   : > { %3287 = vmatmul.mubr.msk.bf16.gmra.mrb[56].mxu0 %vm516_vm2, %v4212_v36 }
  0x83   : > { %3290 = vmatprep.mubr.msk.bf16.mxu0 %vm516_vm2, %v4215_v37 }
  0x8a   : > { %3291 = vmatmul.mubr.msk.bf16.gmra.mrb[60].mxu0 %vm516_vm2, %v4222_v38 }
  0x8b   : > { %3296 = vmatprep.mubr.msk.bf16.mxu0 %vm516_vm2, %v4067_v7 }
  0x92   : > { %3297 = vmatmul.mubr.msk.bf16.vlgmr.msra.gmra.mrb[0].mxu0 %vm516_vm2, %v4070_v8 }
  0x93   : > { %3300 = vmatprep.mubr.msk.bf16.mxu0 %vm516_vm2, %v4075_v9  ;;  %3361 = vmatpush3.bf16.msra.mxu0 %v4229_v39 }
  0x94   : > { %3362 = vmatprep.subr.bf16.mxu0 %v4237_v40 }
  0x97   : > { %3363 = vmatpush3.bf16.msra.mxu0 %v4237_v40 }
  0x98   : > { %3364 = vmatprep.subr.bf16.mxu0 %v4245_v41 }
  0x9a   : > { %3301 = vmatmul.mubr.msk.bf16.gmra.mrb[4].mxu0 %vm516_vm2, %v4082_v10 }
  0x9b   : > { %3304 = vmatprep.mubr.msk.bf16.mxu0 %vm516_vm2, %v4085_v11  ;;  %3365 = vmatpush3.bf16.msra.mxu0 %v4245_v41 }
  0x9c   : > { %3366 = vmatprep.subr.bf16.mxu0 %v4258_v42 }
  0x9f   : > { %3367 = vmatpush3.bf16.msra.mxu0 %v4258_v42 }
  0xa0   : > { %3368 = vmatprep.subr.bf16.mxu0 %v4311_v43 }
  0xa2   : > { %3305 = vmatmul.mubr.msk.bf16.gmra.mrb[8].mxu0 %vm516_vm2, %v4092_v12 }
  0xa3   : > { %3308 = vmatprep.mubr.msk.bf16.mxu0 %vm516_vm2, %v4095_v13  ;;  %3369 = vmatpush3.bf16.msra.mxu0 %v4311_v43 }
  0xa4   : > { %3370 = vmatprep.subr.bf16.mxu0 %v4320_v44 }
  0xa7   : > { %3371 = vmatpush3.bf16.msra.mxu0 %v4320_v44 }
  0xa8   : > { %3372 = vmatprep.subr.bf16.mxu0 %v4331_v45 }
  0xaa   : > { %3309 = vmatmul.mubr.msk.bf16.gmra.mrb[12].mxu0 %vm516_vm2, %v4102_v14 }
  0xab   : > { %3312 = vmatprep.mubr.msk.bf16.mxu0 %vm516_vm2, %v4105_v15  ;;  %3373 = vmatpush3.bf16.msra.mxu0 %v4331_v45 }
  0xac   : > { %3374 = vmatprep.subr.bf16.mxu0 %v4341_v46 }
  0xaf   : > { %3375 = vmatpush3.bf16.msra.mxu0 %v4341_v46 }
  0xb2   : > { %3313 = vmatmul.mubr.msk.bf16.gmra.mrb[16].mxu0 %vm516_vm2, %v4112_v16 }
  0xb3   : > { %3316 = vmatprep.mubr.msk.bf16.mxu0 %vm516_vm2, %v4115_v17 }
  0xba   : > { %3317 = vmatmul.mubr.msk.bf16.gmra.mrb[20].mxu0 %vm516_vm2, %v4122_v18 }
  0xbb   : > { %3320 = vmatprep.mubr.msk.bf16.mxu0 %vm516_vm2, %v4125_v19 }
  0xc2   : > { %3321 = vmatmul.mubr.msk.bf16.gmra.mrb[24].mxu0 %vm516_vm2, %v4132_v20 }
  0xc3   : > { %3324 = vmatprep.mubr.msk.bf16.mxu0 %vm516_vm2, %v4135_v21 }
  0xca   : > { %3325 = vmatmul.mubr.msk.bf16.gmra.mrb[28].mxu0 %vm516_vm2, %v4142_v22 }
  0xcb   : > { %3328 = vmatprep.mubr.msk.bf16.mxu0 %vm516_vm2, %v4145_v23 }
  0xd2   : > { %3329 = vmatmul.mubr.msk.bf16.gmra.mrb[32].mxu0 %vm516_vm2, %v4152_v24 }
  0xd3   : > { %3332 = vmatprep.mubr.msk.bf16.mxu0 %vm516_vm2, %v4155_v25 }
  0xda   : > { %3333 = vmatmul.mubr.msk.bf16.gmra.mrb[36].mxu0 %vm516_vm2, %v4162_v26 }
  0xdb   : > { %3336 = vmatprep.mubr.msk.bf16.mxu0 %vm516_vm2, %v4165_v27 }
  0xe2   : > { %3337 = vmatmul.mubr.msk.bf16.gmra.mrb[40].mxu0 %vm516_vm2, %v4172_v28 }
  0xe3   : > { %3340 = vmatprep.mubr.msk.bf16.mxu0 %vm516_vm2, %v4175_v29 }
  0xea   : > { %3341 = vmatmul.mubr.msk.bf16.gmra.mrb[44].mxu0 %vm516_vm2, %v4182_v30 }
  0xeb   : > { %3344 = vmatprep.mubr.msk.bf16.mxu0 %vm516_vm2, %v4185_v31 }
  0xf2   : > { %3345 = vmatmul.mubr.msk.bf16.gmra.mrb[48].mxu0 %vm516_vm2, %v4192_v32 }
  0xf3   : > { %3348 = vmatprep.mubr.msk.bf16.mxu0 %vm516_vm2, %v4195_v33 }
  0xfa   : > { %3349 = vmatmul.mubr.msk.bf16.gmra.mrb[52].mxu0 %vm516_vm2, %v4202_v34 }
  0xfb   : > { %3352 = vmatprep.mubr.msk.bf16.mxu0 %vm516_vm2, %v4205_v35 }
 0x102   : > { %3353 = vmatmul.mubr.msk.bf16.gmra.mrb[56].mxu0 %vm516_vm2, %v4212_v36 }
 0x103   : > { %3356 = vmatprep.mubr.msk.bf16.mxu0 %vm516_vm2, %v4215_v37 }
 0x10a   : > { %3357 = vmatmul.mubr.msk.bf16.gmra.mrb[60].mxu0 %vm516_vm2, %v4222_v38 }
 0x165   : > { %v3298_v48 = vpop.f32.mrb[0].mxu0 }
 0x166   : > { %v1215_v49 = vadd.f32 %v3298_v48, %v4366_v47  ;;  %v951_v50 = vpop.f32.mrb[1].mxu0 }
 0x167   : > { %v1213_v51 = vadd.f32 %v4366_v47, %v951_v50  ;;  %v3299_v52 = vpop.f32.mrb[2].mxu0 }
 0x168   : > { %v1216_v53 = vadd.f32 %v3299_v52, %v4366_v47  ;;  %v954_v54 = vpop.f32.mrb[3].mxu0  ;;  %v1279_v56 = vmax.f32 %v1215_v49, 0.0 }
 0x169   : > { %v1214_v55 = vadd.f32 %v4366_v47, %v954_v54  ;;  %v1277_v58 = vmax.f32 %v1213_v51, 0.0 }
 0x16a   : > { %v1280_v57 = vmax.f32 %v1216_v53, 0.0 }
 0x16b   : > { %v1278_v59 = vmax.f32 %v1214_v55, 0.0 }
 0x16c   : > { %v4372_v60 = vpack.c.bf16 %v1280_v57, %v1279_v56 }
 0x16d   : > { %v4374_v61 = vpack.c.bf16 %v1278_v59, %v1277_v58  ;;  %v3302_v62 = vpop.f32.mrb[4].mxu0 }
 0x16e   : > { %v1375_v63 = vunpack.c.l.bf16 %v4372_v60  ;;  %v1376_v0 = vunpack.c.h.bf16 %v4372_v60  ;;  %v1219_v1 = vadd.f32 %v3302_v62, %v4366_v47  ;;  %v967_v2 = vpop.f32.mrb[5].mxu0 }
 0x16f   : > { %v1374_v3 = vunpack.c.h.bf16 %v4374_v61  ;;  %v1217_v4 = vadd.f32 %v4366_v47, %v967_v2  ;;  %v3303_v5 = vpop.f32.mrb[6].mxu0  ;;  %v1373_v6 = vunpack.c.l.bf16 %v4374_v61 }
 0x170   : > { %v1439_v7 = vsub.f32 %v1279_v56, %v1375_v63  ;;  %v1440_v8 = vsub.f32 %v1280_v57, %v1376_v0  ;;  %v1220_v9 = vadd.f32 %v3303_v5, %v4366_v47  ;;  %v970_v10 = vpop.f32.mrb[7].mxu0  ;;  %v1283_v15 = vmax.f32 %v1219_v1, 0.0 }
 0x171   : > { %v1438_v11 = vsub.f32 %v1278_v59, %v1374_v3  ;;  %v1218_v12 = vadd.f32 %v4366_v47, %v970_v10  ;;  %v1437_v13 = vsub.f32 %v1277_v58, %v1373_v6  ;;  %v1281_v17 = vmax.f32 %v1217_v4, 0.0 }
 0x172   : > { %v1502_v14 = vpack.c.bf16 %v1440_v8, %v1439_v7  ;;  %v1284_v16 = vmax.f32 %v1220_v9, 0.0 }
 0x173   : > { %v1282_v18 = vmax.f32 %v1218_v12, 0.0  ;;  %v1501_v19 = vpack.c.bf16 %v1438_v11, %v1437_v13 }
 0x174   : > { %v4384_v20 = vpack.c.bf16 %v1284_v16, %v1283_v15 }
 0x175   : > { %v4386_v21 = vpack.c.bf16 %v1282_v18, %v1281_v17  ;;  %v3306_v22 = vpop.f32.mrb[8].mxu0  ;;  %3376 = vmatprep.mubr.bf16.mxu0 %v1501_v19 }
 0x176   : > { %v1380_v23 = vunpack.c.h.bf16 %v4384_v20  ;;  %v1223_v24 = vadd.f32 %v3306_v22, %v4366_v47  ;;  %v983_v25 = vpop.f32.mrb[9].mxu0  ;;  %3377 = vmatmul.mubr.bf16.vlgmr.msra.gmra.mrb[64].mxu0 %v1502_v14  ;;  %v1379_v26 = vunpack.c.l.bf16 %v4384_v20 }
 0x177   : > { %v1378_v27 = vunpack.c.h.bf16 %v4386_v21  ;;  %v1221_v28 = vadd.f32 %v4366_v47, %v983_v25  ;;  %v3307_v29 = vpop.f32.mrb[10].mxu0  ;;  %v1377_v30 = vunpack.c.l.bf16 %v4386_v21 }
 0x178   : > { %v1444_v31 = vsub.f32 %v1284_v16, %v1380_v23  ;;  %v1224_v32 = vadd.f32 %v3307_v29, %v4366_v47  ;;  %v986_v33 = vpop.f32.mrb[11].mxu0  ;;  %v1443_v34 = vsub.f32 %v1283_v15, %v1379_v26  ;;  %v1287_v38 = vmax.f32 %v1223_v24, 0.0 }
 0x179   : > { %v1442_v35 = vsub.f32 %v1282_v18, %v1378_v27  ;;  %v1222_v36 = vadd.f32 %v4366_v47, %v986_v33  ;;  %v1441_v37 = vsub.f32 %v1281_v17, %v1377_v30  ;;  %v1285_v50 = vmax.f32 %v1221_v28, 0.0 }
 0x17a   : > { %v1288_v48 = vmax.f32 %v1224_v32, 0.0  ;;  %v1504_v49 = vpack.c.bf16 %v1444_v31, %v1443_v34 }
 0x17b   : > { %v1286_v51 = vmax.f32 %v1222_v36, 0.0  ;;  %v1503_v52 = vpack.c.bf16 %v1442_v35, %v1441_v37 }
 0x17c   : > { %v4396_v53 = vpack.c.bf16 %v1288_v48, %v1287_v38 }
 0x17d   : > { %v4398_v54 = vpack.c.bf16 %v1286_v51, %v1285_v50  ;;  %v3310_v55 = vpop.f32.mrb[12].mxu0  ;;  %3380 = vmatprep.mubr.bf16.mxu0 %v1503_v52 }
 0x17e   : > { %v1384_v56 = vunpack.c.h.bf16 %v4396_v53  ;;  %v1227_v57 = vadd.f32 %v3310_v55, %v4366_v47  ;;  %v999_v58 = vpop.f32.mrb[13].mxu0  ;;  %3381 = vmatmul.mubr.bf16.gmra.mrb[68].mxu0 %v1504_v49  ;;  %v1383_v59 = vunpack.c.l.bf16 %v4396_v53 }
 0x17f   : > { %v1382_v62 = vunpack.c.h.bf16 %v4398_v54  ;;  %v1225_v63 = vadd.f32 %v4366_v47, %v999_v58  ;;  %v3311_v0 = vpop.f32.mrb[14].mxu0  ;;  %v1381_v1 = vunpack.c.l.bf16 %v4398_v54 }
 0x180   : > { %v1448_v2 = vsub.f32 %v1288_v48, %v1384_v56  ;;  %v1228_v3 = vadd.f32 %v3311_v0, %v4366_v47  ;;  %v1002_v4 = vpop.f32.mrb[15].mxu0  ;;  %v1447_v5 = vsub.f32 %v1287_v38, %v1383_v59  ;;  %v1291_v9 = vmax.f32 %v1227_v57, 0.0 }
 0x181   : > { %v1446_v6 = vsub.f32 %v1286_v51, %v1382_v62  ;;  %v1226_v7 = vadd.f32 %v4366_v47, %v1002_v4  ;;  %v1445_v8 = vsub.f32 %v1285_v50, %v1381_v1  ;;  %v1289_v12 = vmax.f32 %v1225_v63, 0.0 }
 0x182   : > { %v1292_v10 = vmax.f32 %v1228_v3, 0.0  ;;  %v1506_v11 = vpack.c.bf16 %v1448_v2, %v1447_v5 }
 0x183   : > { %v1290_v13 = vmax.f32 %v1226_v7, 0.0  ;;  %v1505_v14 = vpack.c.bf16 %v1446_v6, %v1445_v8 }
 0x184   : > { %v4408_v15 = vpack.c.bf16 %v1292_v10, %v1291_v9 }
 0x185   : > { %v4410_v16 = vpack.c.bf16 %v1290_v13, %v1289_v12  ;;  %v3314_v17 = vpop.f32.mrb[16].mxu0  ;;  %3384 = vmatprep.mubr.bf16.mxu0 %v1505_v14 }
 0x186   : > { %v1388_v18 = vunpack.c.h.bf16 %v4408_v15  ;;  %v1231_v19 = vadd.f32 %v3314_v17, %v4366_v47  ;;  %v1015_v22 = vpop.f32.mrb[17].mxu0  ;;  %3385 = vmatmul.mubr.bf16.gmra.mrb[72].mxu0 %v1506_v11  ;;  %v1387_v23 = vunpack.c.l.bf16 %v4408_v15 }
 0x187   : > { %v1386_v24 = vunpack.c.h.bf16 %v4410_v16  ;;  %v1229_v25 = vadd.f32 %v4366_v47, %v1015_v22  ;;  %v3315_v26 = vpop.f32.mrb[18].mxu0  ;;  %v1385_v27 = vunpack.c.l.bf16 %v4410_v16 }
 0x188   : > { %v1452_v28 = vsub.f32 %v1292_v10, %v1388_v18  ;;  %v1232_v29 = vadd.f32 %v3315_v26, %v4366_v47  ;;  %v1018_v30 = vpop.f32.mrb[19].mxu0  ;;  %v1451_v31 = vsub.f32 %v1291_v9, %v1387_v23  ;;  %v1295_v35 = vmax.f32 %v1231_v19, 0.0 }
 0x189   : > { %v1450_v32 = vsub.f32 %v1290_v13, %v1386_v24  ;;  %v1230_v33 = vadd.f32 %v4366_v47, %v1018_v30  ;;  %v1449_v34 = vsub.f32 %v1289_v12, %v1385_v27  ;;  %v1293_v38 = vmax.f32 %v1229_v25, 0.0 }
 0x18a   : > { %v1296_v36 = vmax.f32 %v1232_v29, 0.0  ;;  %v1508_v37 = vpack.c.bf16 %v1452_v28, %v1451_v31 }
 0x18b   : > { %v1294_v48 = vmax.f32 %v1230_v33, 0.0  ;;  %v1507_v49 = vpack.c.bf16 %v1450_v32, %v1449_v34 }
 0x18c   : > { %v4420_v50 = vpack.c.bf16 %v1296_v36, %v1295_v35 }
 0x18d   : > { %v4422_v51 = vpack.c.bf16 %v1294_v48, %v1293_v38  ;;  %v3318_v52 = vpop.f32.mrb[20].mxu0  ;;  %3388 = vmatprep.mubr.bf16.mxu0 %v1507_v49 }
 0x18e   : > { %v1392_v55 = vunpack.c.h.bf16 %v4420_v50  ;;  %v1235_v56 = vadd.f32 %v3318_v52, %v4366_v47  ;;  %v1031_v57 = vpop.f32.mrb[21].mxu0  ;;  %3389 = vmatmul.mubr.bf16.gmra.mrb[76].mxu0 %v1508_v37  ;;  %v1391_v58 = vunpack.c.l.bf16 %v4420_v50 }
 0x18f   : > { %v1390_v59 = vunpack.c.h.bf16 %v4422_v51  ;;  %v1233_v62 = vadd.f32 %v4366_v47, %v1031_v57  ;;  %v3319_v63 = vpop.f32.mrb[22].mxu0  ;;  %v1389_v0 = vunpack.c.l.bf16 %v4422_v51 }
 0x190   : > { %v1456_v1 = vsub.f32 %v1296_v36, %v1392_v55  ;;  %v1236_v2 = vadd.f32 %v3319_v63, %v4366_v47  ;;  %v1034_v3 = vpop.f32.mrb[23].mxu0  ;;  %v1455_v4 = vsub.f32 %v1295_v35, %v1391_v58  ;;  %v1299_v8 = vmax.f32 %v1235_v56, 0.0 }
 0x191   : > { %v1454_v5 = vsub.f32 %v1294_v48, %v1390_v59  ;;  %v1234_v6 = vadd.f32 %v4366_v47, %v1034_v3  ;;  %v1453_v7 = vsub.f32 %v1293_v38, %v1389_v0  ;;  %v1297_v11 = vmax.f32 %v1233_v62, 0.0 }
 0x192   : > { %v1300_v9 = vmax.f32 %v1236_v2, 0.0  ;;  %v1510_v10 = vpack.c.bf16 %v1456_v1, %v1455_v4 }
 0x193   : > { %v1298_v12 = vmax.f32 %v1234_v6, 0.0  ;;  %v1509_v13 = vpack.c.bf16 %v1454_v5, %v1453_v7 }
 0x194   : > { %v4432_v14 = vpack.c.bf16 %v1300_v9, %v1299_v8 }
 0x195   : > { %v4434_v17 = vpack.c.bf16 %v1298_v12, %v1297_v11  ;;  %v3322_v18 = vpop.f32.mrb[24].mxu0  ;;  %3392 = vmatprep.mubr.bf16.mxu0 %v1509_v13 }
 0x196   : > { %v1396_v19 = vunpack.c.h.bf16 %v4432_v14  ;;  %v1239_v22 = vadd.f32 %v3322_v18, %v4366_v47  ;;  %v1047_v23 = vpop.f32.mrb[25].mxu0  ;;  %3393 = vmatmul.mubr.bf16.gmra.mrb[80].mxu0 %v1510_v10  ;;  %v1395_v24 = vunpack.c.l.bf16 %v4432_v14 }
 0x197   : > { %v1394_v25 = vunpack.c.h.bf16 %v4434_v17  ;;  %v1237_v26 = vadd.f32 %v4366_v47, %v1047_v23  ;;  %v3323_v27 = vpop.f32.mrb[26].mxu0  ;;  %v1393_v28 = vunpack.c.l.bf16 %v4434_v17 }
 0x198   : > { %v1460_v29 = vsub.f32 %v1300_v9, %v1396_v19  ;;  %v1240_v30 = vadd.f32 %v3323_v27, %v4366_v47  ;;  %v1050_v31 = vpop.f32.mrb[27].mxu0  ;;  %v1459_v32 = vsub.f32 %v1299_v8, %v1395_v24  ;;  %v1303_v36 = vmax.f32 %v1239_v22, 0.0 }
 0x199   : > { %v1458_v33 = vsub.f32 %v1298_v12, %v1394_v25  ;;  %v1238_v34 = vadd.f32 %v4366_v47, %v1050_v31  ;;  %v1457_v35 = vsub.f32 %v1297_v11, %v1393_v28  ;;  %v1301_v48 = vmax.f32 %v1237_v26, 0.0 }
 0x19a   : > { %v1304_v37 = vmax.f32 %v1240_v30, 0.0  ;;  %v1512_v38 = vpack.c.bf16 %v1460_v29, %v1459_v32 }
 0x19b   : > { %v1302_v49 = vmax.f32 %v1238_v34, 0.0  ;;  %v1511_v52 = vpack.c.bf16 %v1458_v33, %v1457_v35 }
 0x19c   : > { %v4444_v55 = vpack.c.bf16 %v1304_v37, %v1303_v36 }
 0x19d   : > { %v4446_v56 = vpack.c.bf16 %v1302_v49, %v1301_v48  ;;  %v3326_v57 = vpop.f32.mrb[28].mxu0  ;;  %3396 = vmatprep.mubr.bf16.mxu0 %v1511_v52 }
 0x19e   : > { %v1400_v58 = vunpack.c.h.bf16 %v4444_v55  ;;  %v1243_v59 = vadd.f32 %v3326_v57, %v4366_v47  ;;  %v1063_v62 = vpop.f32.mrb[29].mxu0  ;;  %3397 = vmatmul.mubr.bf16.gmra.mrb[84].mxu0 %v1512_v38  ;;  %v1399_v63 = vunpack.c.l.bf16 %v4444_v55 }
 0x19f   : > { %v1398_v0 = vunpack.c.h.bf16 %v4446_v56  ;;  %v1241_v1 = vadd.f32 %v4366_v47, %v1063_v62  ;;  %v3327_v2 = vpop.f32.mrb[30].mxu0  ;;  %v1397_v3 = vunpack.c.l.bf16 %v4446_v56 }
 0x1a0   : > { %v1464_v4 = vsub.f32 %v1304_v37, %v1400_v58  ;;  %v1244_v5 = vadd.f32 %v3327_v2, %v4366_v47  ;;  %v1066_v6 = vpop.f32.mrb[31].mxu0  ;;  %v1463_v7 = vsub.f32 %v1303_v36, %v1399_v63  ;;  %v1307_v11 = vmax.f32 %v1243_v59, 0.0 }
 0x1a1   : > { %v1462_v8 = vsub.f32 %v1302_v49, %v1398_v0  ;;  %v1242_v9 = vadd.f32 %v4366_v47, %v1066_v6  ;;  %v1461_v10 = vsub.f32 %v1301_v48, %v1397_v3  ;;  %v1305_v18 = vmax.f32 %v1241_v1, 0.0 }
 0x1a2   : > { %v1308_v12 = vmax.f32 %v1244_v5, 0.0  ;;  %v1514_v13 = vpack.c.bf16 %v1464_v4, %v1463_v7 }
 0x1a3   : > { %v1306_v19 = vmax.f32 %v1242_v9, 0.0  ;;  %v1513_v22 = vpack.c.bf16 %v1462_v8, %v1461_v10 }
 0x1a4   : > { %v4456_v23 = vpack.c.bf16 %v1308_v12, %v1307_v11 }
 0x1a5   : > { %v4458_v24 = vpack.c.bf16 %v1306_v19, %v1305_v18  ;;  %v3330_v25 = vpop.f32.mrb[32].mxu0  ;;  %3400 = vmatprep.mubr.bf16.mxu0 %v1513_v22 }
 0x1a6   : > { %v1404_v26 = vunpack.c.h.bf16 %v4456_v23  ;;  %v1247_v27 = vadd.f32 %v3330_v25, %v4366_v47  ;;  %v1079_v28 = vpop.f32.mrb[33].mxu0  ;;  %3401 = vmatmul.mubr.bf16.gmra.mrb[88].mxu0 %v1514_v13  ;;  %v1403_v29 = vunpack.c.l.bf16 %v4456_v23 }
 0x1a7   : > { %v1402_v30 = vunpack.c.h.bf16 %v4458_v24  ;;  %v1245_v31 = vadd.f32 %v4366_v47, %v1079_v28  ;;  %v3331_v32 = vpop.f32.mrb[34].mxu0  ;;  %v1401_v33 = vunpack.c.l.bf16 %v4458_v24 }
 0x1a8   : > { %v1468_v34 = vsub.f32 %v1308_v12, %v1404_v26  ;;  %v1248_v35 = vadd.f32 %v3331_v32, %v4366_v47  ;;  %v1082_v36 = vpop.f32.mrb[35].mxu0  ;;  %v1467_v37 = vsub.f32 %v1307_v11, %v1403_v29  ;;  %v1311_v52 = vmax.f32 %v1247_v27, 0.0 }
 0x1a9   : > { %v1466_v38 = vsub.f32 %v1306_v19, %v1402_v30  ;;  %v1246_v48 = vadd.f32 %v4366_v47, %v1082_v36  ;;  %v1465_v49 = vsub.f32 %v1305_v18, %v1401_v33  ;;  %v1309_v59 = vmax.f32 %v1245_v31, 0.0 }
 0x1aa   : > { %v1312_v57 = vmax.f32 %v1248_v35, 0.0  ;;  %v1516_v58 = vpack.c.bf16 %v1468_v34, %v1467_v37 }
 0x1ab   : > { %v1310_v62 = vmax.f32 %v1246_v48, 0.0  ;;  %v1515_v63 = vpack.c.bf16 %v1466_v38, %v1465_v49 }
 0x1ac   : > { %v4468_v0 = vpack.c.bf16 %v1312_v57, %v1311_v52 }
 0x1ad   : > { %v4470_v1 = vpack.c.bf16 %v1310_v62, %v1309_v59  ;;  %v3334_v2 = vpop.f32.mrb[36].mxu0  ;;  %3404 = vmatprep.mubr.bf16.mxu0 %v1515_v63 }
 0x1ae   : > { %v1408_v3 = vunpack.c.h.bf16 %v4468_v0  ;;  %v1251_v4 = vadd.f32 %v3334_v2, %v4366_v47  ;;  %v1095_v5 = vpop.f32.mrb[37].mxu0  ;;  %3405 = vmatmul.mubr.bf16.gmra.mrb[92].mxu0 %v1516_v58  ;;  %v1407_v6 = vunpack.c.l.bf16 %v4468_v0 }
 0x1af   : > { %v1406_v7 = vunpack.c.h.bf16 %v4470_v1  ;;  %v1249_v8 = vadd.f32 %v4366_v47, %v1095_v5  ;;  %v3335_v9 = vpop.f32.mrb[38].mxu0  ;;  %v1405_v10 = vunpack.c.l.bf16 %v4470_v1 }
 0x1b0   : > { %v1472_v11 = vsub.f32 %v1312_v57, %v1408_v3  ;;  %v1252_v12 = vadd.f32 %v3335_v9, %v4366_v47  ;;  %v1098_v13 = vpop.f32.mrb[39].mxu0  ;;  %v1471_v18 = vsub.f32 %v1311_v52, %v1407_v6  ;;  %v1315_v26 = vmax.f32 %v1251_v4, 0.0 }
 0x1b1   : > { %v1470_v19 = vsub.f32 %v1310_v62, %v1406_v7  ;;  %v1250_v22 = vadd.f32 %v4366_v47, %v1098_v13  ;;  %v1469_v25 = vsub.f32 %v1309_v59, %v1405_v10  ;;  %v1313_v29 = vmax.f32 %v1249_v8, 0.0 }
 0x1b2   : > { %v1316_v27 = vmax.f32 %v1252_v12, 0.0  ;;  %v1518_v28 = vpack.c.bf16 %v1472_v11, %v1471_v18 }
 0x1b3   : > { %v1314_v30 = vmax.f32 %v1250_v22, 0.0  ;;  %v1517_v31 = vpack.c.bf16 %v1470_v19, %v1469_v25 }
 0x1b4   : > { %v4480_v32 = vpack.c.bf16 %v1316_v27, %v1315_v26 }
 0x1b5   : > { %v4482_v33 = vpack.c.bf16 %v1314_v30, %v1313_v29  ;;  %v3338_v34 = vpop.f32.mrb[40].mxu0  ;;  %3408 = vmatprep.mubr.bf16.mxu0 %v1517_v31 }
 0x1b6   : > { %v1412_v35 = vunpack.c.h.bf16 %v4480_v32  ;;  %v1255_v36 = vadd.f32 %v3338_v34, %v4366_v47  ;;  %v1111_v37 = vpop.f32.mrb[41].mxu0  ;;  %3409 = vmatmul.mubr.bf16.gmra.mrb[96].mxu0 %v1518_v28  ;;  %v1411_v38 = vunpack.c.l.bf16 %v4480_v32 }
 0x1b7   : > { %v1253_v48 = vadd.f32 %v4366_v47, %v1111_v37  ;;  %v3339_v49 = vpop.f32.mrb[42].mxu0  ;;  %v1409_v52 = vunpack.c.l.bf16 %v4482_v33  ;;  %v1410_v57 = vunpack.c.h.bf16 %v4482_v33 }
 0x1b8   : > { %v1476_v58 = vsub.f32 %v1316_v27, %v1412_v35  ;;  %v1256_v59 = vadd.f32 %v3339_v49, %v4366_v47  ;;  %v1114_v62 = vpop.f32.mrb[43].mxu0  ;;  %v1475_v63 = vsub.f32 %v1315_v26, %v1411_v38  ;;  %v1319_v5 = vmax.f32 %v1255_v36, 0.0 }
 0x1b9   : > { %v1254_v2 = vadd.f32 %v4366_v47, %v1114_v62  ;;  %v1473_v3 = vsub.f32 %v1313_v29, %v1409_v52  ;;  %v1474_v4 = vsub.f32 %v1314_v30, %v1410_v57  ;;  %v1317_v8 = vmax.f32 %v1253_v48, 0.0 }
 0x1ba   : > { %v1320_v6 = vmax.f32 %v1256_v59, 0.0  ;;  %v1520_v7 = vpack.c.bf16 %v1476_v58, %v1475_v63 }
 0x1bb   : > { %v1318_v9 = vmax.f32 %v1254_v2, 0.0  ;;  %v1519_v10 = vpack.c.bf16 %v1474_v4, %v1473_v3 }
 0x1bc   : > { %v4492_v11 = vpack.c.bf16 %v1320_v6, %v1319_v5 }
 0x1bd   : > { %v4494_v12 = vpack.c.bf16 %v1318_v9, %v1317_v8  ;;  %v3342_v13 = vpop.f32.mrb[44].mxu0  ;;  %3412 = vmatprep.mubr.bf16.mxu1 %v1519_v10 }
 0x1be   : > { %v1416_v18 = vunpack.c.h.bf16 %v4492_v11  ;;  %v1259_v19 = vadd.f32 %v3342_v13, %v4366_v47  ;;  %v1127_v22 = vpop.f32.mrb[45].mxu0  ;;  %3413 = vmatmul.mubr.bf16.vlgmr.msra.gmra.mrb[0].mxu1 %v1520_v7  ;;  %v1415_v25 = vunpack.c.l.bf16 %v4492_v11 }
 0x1bf   : > { %v1414_v26 = vunpack.c.h.bf16 %v4494_v12  ;;  %v1257_v27 = vadd.f32 %v4366_v47, %v1127_v22  ;;  %3441 = vmatpush3.bf16.msra.mxu1 %v4229_v39  ;;  %v3343_v28 = vpop.f32.mrb[46].mxu0  ;;  %v1413_v29 = vunpack.c.l.bf16 %v4494_v12 }
 0x1c0   : > { %v1480_v30 = vsub.f32 %v1320_v6, %v1416_v18  ;;  %v1260_v31 = vadd.f32 %v3343_v28, %v4366_v47  ;;  %v1130_v34 = vpop.f32.mrb[47].mxu0  ;;  %3442 = vmatprep.subr.bf16.mxu1 %v4237_v40  ;;  %v1479_v35 = vsub.f32 %v1319_v5, %v1415_v25  ;;  %v1323_v48 = vmax.f32 %v1259_v19, 0.0 }
 0x1c1   : > { %v1478_v36 = vsub.f32 %v1318_v9, %v1414_v26  ;;  %v1258_v37 = vadd.f32 %v4366_v47, %v1130_v34  ;;  %v1477_v38 = vsub.f32 %v1317_v8, %v1413_v29  ;;  %v1321_v57 = vmax.f32 %v1257_v27, 0.0 }
 0x1c2   : > { %v1324_v49 = vmax.f32 %v1260_v31, 0.0  ;;  %v1522_v52 = vpack.c.bf16 %v1480_v30, %v1479_v35 }
 0x1c3   : > { %v1322_v58 = vmax.f32 %v1258_v37, 0.0  ;;  %v1521_v39 = vpack.c.bf16 %v1478_v36, %v1477_v38  ;;  %3443 = vmatpush3.bf16.msra.mxu1 %v4237_v40 }
 0x1c4   : > { %v4507_v59 = vpack.c.bf16 %v1324_v49, %v1323_v48  ;;  %3444 = vmatprep.subr.bf16.mxu1 %v4245_v41 }
 0x1c5   : > { %v4510_v62 = vpack.c.bf16 %v1322_v58, %v1321_v57  ;;  %v3346_v63 = vpop.f32.mrb[48].mxu0  ;;  %3416 = vmatprep.mubr.bf16.mxu1 %v1521_v39 }
 0x1c6   : > { %v1420_v2 = vunpack.c.h.bf16 %v4507_v59  ;;  %v1263_v3 = vadd.f32 %v3346_v63, %v4366_v47  ;;  %v1143_v4 = vpop.f32.mrb[49].mxu0  ;;  %3417 = vmatmul.mubr.bf16.gmra.mrb[4].mxu1 %v1522_v52  ;;  %v1419_v5 = vunpack.c.l.bf16 %v4507_v59 }
 0x1c7   : > { %v1418_v6 = vunpack.c.h.bf16 %v4510_v62  ;;  %v1261_v40 = vadd.f32 %v4366_v47, %v1143_v4  ;;  %v3347_v7 = vpop.f32.mrb[50].mxu0  ;;  %3445 = vmatpush3.bf16.msra.mxu1 %v4245_v41  ;;  %v1417_v8 = vunpack.c.l.bf16 %v4510_v62 }
 0x1c8   : > { %v1484_v9 = vsub.f32 %v1324_v49, %v1420_v2  ;;  %v1264_v10 = vadd.f32 %v3347_v7, %v4366_v47  ;;  %v1146_v13 = vpop.f32.mrb[51].mxu0  ;;  %v1483_v18 = vsub.f32 %v1323_v48, %v1419_v5  ;;  %3446 = vmatprep.subr.bf16.mxu1 %v4258_v42  ;;  %v1327_v26 = vmax.f32 %v1263_v3, 0.0 }
 0x1c9   : > { %v1482_v19 = vsub.f32 %v1322_v58, %v1418_v6  ;;  %v1262_v22 = vadd.f32 %v4366_v47, %v1146_v13  ;;  %v1481_v25 = vsub.f32 %v1321_v57, %v1417_v8  ;;  %v1325_v29 = vmax.f32 %v1261_v40, 0.0 }
 0x1ca   : > { %v1328_v27 = vmax.f32 %v1264_v10, 0.0  ;;  %v1524_v28 = vpack.c.bf16 %v1484_v9, %v1483_v18 }
 0x1cb   : > { %v1326_v30 = vmax.f32 %v1262_v22, 0.0  ;;  %v1523_v31 = vpack.c.bf16 %v1482_v19, %v1481_v25  ;;  %3447 = vmatpush3.bf16.msra.mxu1 %v4258_v42 }
 0x1cc   : > { %v4523_v41 = vpack.c.bf16 %v1328_v27, %v1327_v26  ;;  %3448 = vmatprep.subr.bf16.mxu1 %v4311_v43 }
 0x1cd   : > { %v4526_v34 = vpack.c.bf16 %v1326_v30, %v1325_v29  ;;  %v3350_v35 = vpop.f32.mrb[52].mxu0  ;;  %3420 = vmatprep.mubr.bf16.mxu1 %v1523_v31 }
 0x1ce   : > { %v1424_v36 = vunpack.c.h.bf16 %v4523_v41  ;;  %v1267_v37 = vadd.f32 %v3350_v35, %v4366_v47  ;;  %v1159_v38 = vpop.f32.mrb[53].mxu0  ;;  %3421 = vmatmul.mubr.bf16.gmra.mrb[8].mxu1 %v1524_v28  ;;  %v1423_v48 = vunpack.c.l.bf16 %v4523_v41 }
 0x1cf   : > { %v1422_v49 = vunpack.c.h.bf16 %v4526_v34  ;;  %v1265_v42 = vadd.f32 %v4366_v47, %v1159_v38  ;;  %v3351_v52 = vpop.f32.mrb[54].mxu0  ;;  %v1421_v57 = vunpack.c.l.bf16 %v4526_v34  ;;  %3449 = vmatpush3.bf16.msra.mxu1 %v4311_v43 }
 0x1d0   : > { %v1488_v58 = vsub.f32 %v1328_v27, %v1424_v36  ;;  %v1268_v39 = vadd.f32 %v3351_v52, %v4366_v47  ;;  %v1162_v63 = vpop.f32.mrb[55].mxu0  ;;  %v1487_v2 = vsub.f32 %v1327_v26, %v1423_v48  ;;  %3450 = vmatprep.subr.bf16.mxu1 %v4320_v44  ;;  %v1331_v6 = vmax.f32 %v1267_v37, 0.0  ;;  %v3859_v37 = vld [vmem:[%s5113_s5] sm:$0xff]  }
 0x1d1   : > { %v1486_v3 = vsub.f32 %v1326_v30, %v1422_v49  ;;  %v1266_v4 = vadd.f32 %v4366_v47, %v1162_v63  ;;  %v1485_v5 = vsub.f32 %v1325_v29, %v1421_v57  ;;  %v1329_v8 = vmax.f32 %v1265_v42, 0.0 }
 0x1d2   : > { %v1332_v40 = vmax.f32 %v1268_v39, 0.0  ;;  %v1526_v7 = vpack.c.bf16 %v1488_v58, %v1487_v2 }
 0x1d3   : > { %v1330_v9 = vmax.f32 %v1266_v4, 0.0  ;;  %v1525_v10 = vpack.c.bf16 %v1486_v3, %v1485_v5  ;;  %3451 = vmatpush3.bf16.msra.mxu1 %v4320_v44 }
 0x1d4   : > { %v4539_v43 = vpack.c.bf16 %v1332_v40, %v1331_v6  ;;  %3452 = vmatprep.subr.bf16.mxu1 %v4331_v45 }
 0x1d5   : > { %v4542_v13 = vpack.c.bf16 %v1330_v9, %v1329_v8  ;;  %v3354_v18 = vpop.f32.mrb[56].mxu0  ;;  %3424 = vmatprep.mubr.bf16.mxu1 %v1525_v10 }
 0x1d6   : > { %v1428_v19 = vunpack.c.h.bf16 %v4539_v43  ;;  %v1271_v22 = vadd.f32 %v3354_v18, %v4366_v47  ;;  %v1175_v25 = vpop.f32.mrb[57].mxu0  ;;  %3425 = vmatmul.mubr.bf16.gmra.mrb[12].mxu1 %v1526_v7  ;;  %v1427_v26 = vunpack.c.l.bf16 %v4539_v43 }
 0x1d7   : > { %v1426_v27 = vunpack.c.h.bf16 %v4542_v13  ;;  %v1269_v44 = vadd.f32 %v4366_v47, %v1175_v25  ;;  %v3355_v28 = vpop.f32.mrb[58].mxu0  ;;  %v1425_v29 = vunpack.c.l.bf16 %v4542_v13  ;;  %3453 = vmatpush3.bf16.msra.mxu1 %v4331_v45 }
 0x1d8   : > { %v1492_v30 = vsub.f32 %v1332_v40, %v1428_v19  ;;  %v1272_v31 = vadd.f32 %v3355_v28, %v4366_v47  ;;  %v1178_v35 = vpop.f32.mrb[59].mxu0  ;;  %v1491_v36 = vsub.f32 %v1331_v6, %v1427_v26  ;;  %3454 = vmatprep.subr.bf16.mxu1 %v4341_v46  ;;  %v1335_v42 = vmax.f32 %v1271_v22, 0.0 }
 0x1d9   : > { %v1490_v38 = vsub.f32 %v1330_v9, %v1426_v27  ;;  %v1270_v48 = vadd.f32 %v4366_v47, %v1178_v35  ;;  %v1489_v49 = vsub.f32 %v1329_v8, %v1425_v29  ;;  %v1333_v58 = vmax.f32 %v1269_v44, 0.0 }
 0x1da   : > { %v1336_v52 = vmax.f32 %v1272_v31, 0.0  ;;  %v1528_v57 = vpack.c.bf16 %v1492_v30, %v1491_v36 }
 0x1db   : > { %v1334_v45 = vmax.f32 %v1270_v48, 0.0  ;;  %v1527_v39 = vpack.c.bf16 %v1490_v38, %v1489_v49  ;;  %3455 = vmatpush3.bf16.msra.mxu1 %v4341_v46 }
 0x1dc   : > { %v4558_v63 = vpack.c.bf16 %v1336_v52, %v1335_v42  ;;  %3520 = vmatprep.subr.bf16.mxu1 %v3859_v37 }
 0x1dd   : > { %v4560_v2 = vpack.c.bf16 %v1334_v45, %v1333_v58  ;;  %v3358_v3 = vpop.f32.mrb[60].mxu0  ;;  %3428 = vmatprep.mubr.bf16.mxu1 %v1527_v39 }
 0x1de   : > { %v1432_v4 = vunpack.c.h.bf16 %v4558_v63  ;;  %v1275_v5 = vadd.f32 %v3358_v3, %v4366_v47  ;;  %v1191_v6 = vpop.f32.mrb[61].mxu0  ;;  %3429 = vmatmul.mubr.bf16.gmra.mrb[16].mxu1 %v1528_v57  ;;  %v1431_v40 = vunpack.c.l.bf16 %v4558_v63 }
 0x1df   : > { %v1430_v7 = vunpack.c.h.bf16 %v4560_v2  ;;  %v1273_v8 = vadd.f32 %v4366_v47, %v1191_v6  ;;  %v3359_v46 = vpop.f32.mrb[62].mxu0  ;;  %v1429_v9 = vunpack.c.l.bf16 %v4560_v2  ;;  %v3862_v6 = vld [vmem:[%s5113_s5 + $0x18] sm:$0xff]  }
 0x1e0   : > { %v1496_v10 = vsub.f32 %v1336_v52, %v1432_v4  ;;  %v1276_v18 = vadd.f32 %v3359_v46, %v4366_v47  ;;  %v1194_v19 = vpop.f32.mrb[63].mxu0  ;;  %v1495_v22 = vsub.f32 %v1335_v42, %v1431_v40  ;;  %v1339_v44 = vmax.f32 %v1275_v5, 0.0  ;;  %v3860_v4 = vld [vmem:[%s5113_s5 + $0x8] sm:$0xff]   ;;  %v3861_v5 = vld [vmem:[%s5113_s5 + $0x10] sm:$0xff]  }
 0x1e1   : > { %v1494_v25 = vsub.f32 %v1334_v45, %v1430_v7  ;;  %v1274_v26 = vadd.f32 %v4366_v47, %v1194_v19  ;;  %v1493_v27 = vsub.f32 %v1333_v58, %v1429_v9  ;;  %v1337_v30 = vmax.f32 %v1273_v8, 0.0  ;;  %v3864_v40 = vld [vmem:[%s5113_s5 + $0x28] sm:$0xff]   ;;  %v3865_v7 = vld [vmem:[%s5113_s5 + $0x30] sm:$0xff]   ;;  %v3866_v8 = vld [vmem:[%s5113_s5 + $0x38] sm:$0xff]  }
 0x1e2   : > { %v1340_v28 = vmax.f32 %v1276_v18, 0.0  ;;  %v1530_v29 = vpack.c.bf16 %v1496_v10, %v1495_v22 }
 0x1e3   : > { %v1338_v31 = vmax.f32 %v1274_v26, 0.0  ;;  %v1529_v35 = vpack.c.bf16 %v1494_v25, %v1493_v27 }
 0x1e4   : > { %v4570_v36 = vpack.c.bf16 %v1340_v28, %v1339_v44 }
 0x1e5   : > { %v4572_v38 = vpack.c.bf16 %v1338_v31, %v1337_v30  ;;  %3432 = vmatprep.mubr.bf16.mxu1 %v1529_v35 }
 0x1e6   : > { %v1436_v48 = vunpack.c.h.bf16 %v4570_v36  ;;  %3433 = vmatmul.mubr.bf16.gmra.mrb[20].mxu1 %v1530_v29  ;;  %v1435_v49 = vunpack.c.l.bf16 %v4570_v36 }
 0x1e7   : > { %v1434_v42 = vunpack.c.h.bf16 %v4572_v38  ;;  %v1433_v47 = vunpack.c.l.bf16 %v4572_v38 }
 0x1e8   : > { %v1500_v52 = vsub.f32 %v1340_v28, %v1436_v48  ;;  %v1499_v57 = vsub.f32 %v1339_v44, %v1435_v49 }
 0x1e9   : > { %v1498_v58 = vsub.f32 %v1338_v31, %v1434_v42  ;;  %v1497_v45 = vsub.f32 %v1337_v30, %v1433_v47 }
 0x1ea   : > { %v1532_v39 = vpack.c.bf16 %v1500_v52, %v1499_v57 }
 0x1eb   : > { %v1531_v3 = vpack.c.bf16 %v1498_v58, %v1497_v45 }
 0x1ed   : > { %3436 = vmatprep.mubr.bf16.mxu1 %v1531_v3 }
 0x1ee   : > { %3437 = vmatmul.mubr.bf16.gmra.mrb[24].mxu1 %v1532_v39 }
 0x1ef   : > { %3456 = vmatprep.mubr.bf16.mxu1 %v4374_v61 }
 0x1f6   : > { %3457 = vmatmul.mubr.bf16.vlgmr.msra.gmra.mrb[28].mxu1 %v4372_v60 }
 0x1f7   : > { %3521 = vmatpush3.bf16.msra.mxu1 %v3859_v37  ;;  %3460 = vmatprep.mubr.bf16.mxu1 %v4386_v21  ;;  %v3863_v37 = vld [vmem:[%s5113_s5 + $0x20] sm:$0xff]  }
 0x1f8   : > { %3522 = vmatprep.subr.bf16.mxu1 %v3860_v4 }
 0x1fb   : > { %3523 = vmatpush3.bf16.msra.mxu1 %v3860_v4 }
 0x1fc   : > { %3524 = vmatprep.subr.bf16.mxu1 %v3861_v5 }
 0x1fe   : > { %3461 = vmatmul.mubr.bf16.gmra.mrb[32].mxu1 %v4384_v20 }
 0x1ff   : > { %3464 = vmatprep.mubr.bf16.mxu1 %v4398_v54  ;;  %3525 = vmatpush3.bf16.msra.mxu1 %v3861_v5 }
 0x200   : > { %3526 = vmatprep.subr.bf16.mxu1 %v3862_v6 }
 0x203   : > { %3527 = vmatpush3.bf16.msra.mxu1 %v3862_v6 }
 0x204   : > { %3528 = vmatprep.subr.bf16.mxu1 %v3863_v37 }
 0x206   : > { %3465 = vmatmul.mubr.bf16.gmra.mrb[36].mxu1 %v4396_v53 }
 0x207   : > { %3468 = vmatprep.mubr.bf16.mxu1 %v4410_v16  ;;  %3529 = vmatpush3.bf16.msra.mxu1 %v3863_v37 }
 0x208   : > { %3530 = vmatprep.subr.bf16.mxu1 %v3864_v40 }
 0x20b   : > { %3531 = vmatpush3.bf16.msra.mxu1 %v3864_v40 }
 0x20c   : > { %3532 = vmatprep.subr.bf16.mxu1 %v3865_v7 }
 0x20e   : > { %3469 = vmatmul.mubr.bf16.gmra.mrb[40].mxu1 %v4408_v15 }
 0x20f   : > { %3472 = vmatprep.mubr.bf16.mxu1 %v4422_v51  ;;  %3533 = vmatpush3.bf16.msra.mxu1 %v3865_v7 }
 0x210   : > { %3534 = vmatprep.subr.bf16.mxu1 %v3866_v8 }
 0x213   : > { %3535 = vmatpush3.bf16.msra.mxu1 %v3866_v8 }
 0x216   : > { %3473 = vmatmul.mubr.bf16.gmra.mrb[44].mxu1 %v4420_v50 }
 0x217   : > { %3476 = vmatprep.mubr.bf16.mxu1 %v4434_v17 }
 0x21e   : > { %3477 = vmatmul.mubr.bf16.gmra.mrb[48].mxu1 %v4432_v14 }
 0x21f   : > { %3480 = vmatprep.mubr.bf16.mxu1 %v4446_v56 }
 0x226   : > { %3481 = vmatmul.mubr.bf16.gmra.mrb[52].mxu1 %v4444_v55 }
 0x227   : > { %3484 = vmatprep.mubr.bf16.mxu1 %v4458_v24 }
 0x22e   : > { %3485 = vmatmul.mubr.bf16.gmra.mrb[56].mxu1 %v4456_v23 }
 0x22f   : > { %3488 = vmatprep.mubr.bf16.mxu1 %v4470_v1 }
 0x236   : > { %3489 = vmatmul.mubr.bf16.gmra.mrb[60].mxu1 %v4468_v0 }
 0x237   : > { %3492 = vmatprep.mubr.bf16.mxu1 %v4482_v33 }
 0x23e   : > { %3493 = vmatmul.mubr.bf16.gmra.mrb[0].mxu1 %v4480_v32 }
 0x23f   : > { %3496 = vmatprep.mubr.bf16.mxu1 %v4494_v12 }
 0x246   : > { %3497 = vmatmul.mubr.bf16.gmra.mrb[4].mxu1 %v4492_v11 }
 0x247   : > { %3500 = vmatprep.mubr.bf16.mxu1 %v4510_v62 }
 0x249   : > { %v4622_v46 = vpop.f32.mrb[64].mxu0 }
 0x24a   : > { %v4624_v9 = vpop.f32.mrb[65].mxu0 }
 0x24b   : > { %v4626_v10 = vpop.f32.mrb[66].mxu0 }
 0x24c   : > { %v4628_v18 = vpop.f32.mrb[67].mxu0 }
 0x24e   : > { %3501 = vmatmul.mubr.bf16.gmra.mrb[8].mxu1 %v4507_v59 }
 0x24f   : > { %3504 = vmatprep.mubr.bf16.mxu1 %v4526_v34 }
 0x251   : > { %v4632_v19 = vpop.f32.mrb[68].mxu0 }
 0x252   : > { %v4634_v22 = vpop.f32.mrb[69].mxu0 }
 0x253   : > { %v4636_v25 = vpop.f32.mrb[70].mxu0 }
 0x254   : > { %v4638_v26 = vpop.f32.mrb[71].mxu0 }
 0x256   : > { %3505 = vmatmul.mubr.bf16.gmra.mrb[12].mxu1 %v4523_v41 }
 0x257   : > { %3508 = vmatprep.mubr.bf16.mxu1 %v4542_v13 }
 0x259   : > { %v4642_v27 = vpop.f32.mrb[72].mxu0 }
 0x25a   : > { %v4644_v44 = vpop.f32.mrb[73].mxu0 }
 0x25b   : > { %v4646_v28 = vpop.f32.mrb[74].mxu0 }
 0x25c   : > { %v4648_v29 = vpop.f32.mrb[75].mxu0 }
 0x25e   : > { %3509 = vmatmul.mubr.bf16.gmra.mrb[16].mxu1 %v4539_v43 }
 0x25f   : > { %3512 = vmatprep.mubr.bf16.mxu1 %v4560_v2 }
 0x261   : > { %v4652_v30 = vpop.f32.mrb[76].mxu0 }
 0x262   : > { %v4654_v31 = vpop.f32.mrb[77].mxu0 }
 0x263   : > { %v4656_v35 = vpop.f32.mrb[78].mxu0 }
 0x264   : > { %v4658_v48 = vpop.f32.mrb[79].mxu0 }
 0x266   : > { %3513 = vmatmul.mubr.bf16.gmra.mrb[20].mxu1 %v4558_v63 }
 0x267   : > { %3516 = vmatprep.mubr.bf16.mxu1 %v4572_v38 }
 0x269   : > { %v4662_v49 = vpop.f32.mrb[80].mxu0 }
 0x26a   : > { %v4664_v42 = vpop.f32.mrb[81].mxu0 }
 0x26b   : > { %v4666_v47 = vpop.f32.mrb[82].mxu0 }
 0x26c   : > { %v4668_v52 = vpop.f32.mrb[83].mxu0 }
 0x26e   : > { %3517 = vmatmul.mubr.bf16.gmra.mrb[24].mxu1 %v4570_v36 }
 0x26f   : > { %3536 = vmatprep.mubr.bf16.mxu1 %v4374_v61 }
 0x271   : > { %v4672_v57 = vpop.f32.mrb[84].mxu0 }
 0x272   : > { %v4674_v58 = vpop.f32.mrb[85].mxu0 }
 0x273   : > { %v4676_v45 = vpop.f32.mrb[86].mxu0 }
 0x274   : > { %v4678_v39 = vpop.f32.mrb[87].mxu0 }
 0x276   : > { %3537 = vmatmul.mubr.bf16.vlgmr.msra.gmra.mrb[28].mxu1 %v4372_v60 }
 0x277   : > { %3540 = vmatprep.mubr.bf16.mxu1 %v4386_v21 }
 0x279   : > { %v4682_v3 = vpop.f32.mrb[88].mxu0 }
 0x27a   : > { %v4684_v4 = vpop.f32.mrb[89].mxu0 }
 0x27b   : > { %v4686_v5 = vpop.f32.mrb[90].mxu0 }
 0x27c   : > { %v4688_v6 = vpop.f32.mrb[91].mxu0 }
 0x27e   : > { %3541 = vmatmul.mubr.bf16.gmra.mrb[32].mxu1 %v4384_v20 }
 0x27f   : > { %3544 = vmatprep.mubr.bf16.mxu1 %v4398_v54  ;;  %v4738_v54 = vld [vmem:[%s5114_s6] ss:$0 sm:$0xff] }
 0x281   : > { %v4692_v61 = vpop.f32.mrb[92].mxu0 }
 0x282   : > { %v4694_v37 = vpop.f32.mrb[93].mxu0 }
 0x283   : > { %v4696_v40 = vpop.f32.mrb[94].mxu0 }
 0x284   : > { %v4698_v60 = vpop.f32.mrb[95].mxu0 }
 0x286   : > { %3545 = vmatmul.mubr.bf16.gmra.mrb[36].mxu1 %v4396_v53 }
 0x287   : > { %3548 = vmatprep.mubr.bf16.mxu1 %v4410_v16 }
 0x289   : > { %v4702_v21 = vpop.f32.mrb[96].mxu0 }
 0x28a   : > { %v4704_v7 = vpop.f32.mrb[97].mxu0 }
 0x28b   : > { %v4706_v8 = vpop.f32.mrb[98].mxu0 }
 0x28c   : > { %v4708_v20 = vpop.f32.mrb[99].mxu0 }
 0x28e   : > { %3549 = vmatmul.mubr.bf16.gmra.mrb[40].mxu1 %v4408_v15 }
 0x28f   : > { %3552 = vmatprep.mubr.bf16.mxu1 %v4422_v51 }
 0x296   : > { %3553 = vmatmul.mubr.bf16.gmra.mrb[44].mxu1 %v4420_v50 }
 0x297   : > { %3556 = vmatprep.mubr.bf16.mxu1 %v4434_v17 }
 0x29e   : > { %3557 = vmatmul.mubr.bf16.gmra.mrb[48].mxu1 %v4432_v14 }
 0x29f   : > { %3560 = vmatprep.mubr.bf16.mxu1 %v4446_v56 }
 0x2a6   : > { %3561 = vmatmul.mubr.bf16.gmra.mrb[52].mxu1 %v4444_v55 }
 0x2a7   : > { %3564 = vmatprep.mubr.bf16.mxu1 %v4458_v24  ;;  %v2663_v24 = vlaneseq }
 0x2ae   : > { %3565 = vmatmul.mubr.bf16.gmra.mrb[56].mxu1 %v4456_v23 }
 0x2af   : > { %3568 = vmatprep.mubr.bf16.mxu1 %v4470_v1 }
 0x2b6   : > { %3569 = vmatmul.mubr.bf16.gmra.mrb[60].mxu1 %v4468_v0 }
 0x2b7   : > { %3572 = vmatprep.mubr.bf16.mxu1 %v4482_v33  ;;  %v4748_v33 = vand.u32 127, %v2663_v24 }
 0x2b9   : > { %vm2665_vm3 = vcmp.eq.s32.totalorder %v4748_v33, 9 }
 0x2be   : > { %3573 = vmatmul.mubr.bf16.gmra.mrb[0].mxu1 %v4480_v32 }
 0x2bf   : > { %3576 = vmatprep.mubr.bf16.mxu1 %v4494_v12 }
 0x2c6   : > { %3577 = vmatmul.mubr.bf16.gmra.mrb[4].mxu1 %v4492_v11 }
 0x2c7   : > { %3580 = vmatprep.mubr.bf16.mxu1 %v4510_v62 }
 0x2ce   : > { %3581 = vmatmul.mubr.bf16.gmra.mrb[8].mxu1 %v4507_v59 }
 0x2cf   : > { %3584 = vmatprep.mubr.bf16.mxu1 %v4526_v34 }
 0x2d6   : > { %3585 = vmatmul.mubr.bf16.gmra.mrb[12].mxu1 %v4523_v41 }
 0x2d7   : > { %3588 = vmatprep.mubr.bf16.mxu1 %v4542_v13 }
 0x2de   : > { %3589 = vmatmul.mubr.bf16.gmra.mrb[16].mxu1 %v4539_v43 }
 0x2df   : > { %3592 = vmatprep.mubr.bf16.mxu1 %v4560_v2 }
 0x2e6   : > { %3593 = vmatmul.mubr.bf16.gmra.mrb[20].mxu1 %v4558_v63 }
 0x2e7   : > { %3596 = vmatprep.mubr.bf16.mxu1 %v4572_v38 }
 0x2ee   : > { %3597 = vmatmul.mubr.bf16.gmra.mrb[24].mxu1 %v4570_v36 }
 0x349   : > { %v3538_v53 = vpop.f32.mrb[28].mxu1 }
 0x34a   : > { %v3616_v15 = vadd.f32 %v3538_v53, %v4622_v46  ;;  %v2273_v16 = vpop.f32.mrb[29].mxu1 }
 0x34b   : > { %v3617_v50 = vadd.f32 %v2273_v16, %v4624_v9  ;;  %v3539_v51 = vpop.f32.mrb[30].mxu1 }
 0x34c   : > { %v2601_v14 = vadd.f32 %v3616_v15, %v4738_v54  ;;  %v3618_v17 = vadd.f32 %v3539_v51, %v4626_v10  ;;  %v2276_v55 = vpop.f32.mrb[31].mxu1 }
 0x34d   : > { %v2599_v56 = vadd.f32 %v3617_v50, %v4738_v54  ;;  %v3619_v23 = vadd.f32 %v2276_v55, %v4628_v18 }
 0x34e   : > { %3867 = vtanh.f32 %v2601_v14  ;;  %v2602_v0 = vadd.f32 %v3618_v17, %v4738_v54 }
 0x34f   : > { %3869 = vtanh.f32 %v2599_v56  ;;  %v2600_v1 = vadd.f32 %v3619_v23, %v4738_v54 }
 0x350   : > { %3871 = vtanh.f32 %v2602_v0 }
 0x351   : > { %3873 = vtanh.f32 %v2600_v1  ;;  %v3542_v32 = vpop.f32.mrb[32].mxu1 }
 0x352   : > { %v3620_v11 = vadd.f32 %v3542_v32, %v4632_v19  ;;  %v2289_v12 = vpop.f32.mrb[33].mxu1 }
 0x353   : > { %v3621_v59 = vadd.f32 %v2289_v12, %v4634_v22  ;;  %v3543_v62 = vpop.f32.mrb[34].mxu1 }
 0x354   : > { %v2605_v41 = vadd.f32 %v3620_v11, %v4738_v54  ;;  %v3622_v34 = vadd.f32 %v3543_v62, %v4636_v25  ;;  %v2292_v43 = vpop.f32.mrb[35].mxu1 }
 0x355   : > { %v2603_v13 = vadd.f32 %v3621_v59, %v4738_v54  ;;  %v3623_v63 = vadd.f32 %v2292_v43, %v4638_v26 }
 0x356   : > { %3875 = vtanh.f32 %v2605_v41  ;;  %v2606_v2 = vadd.f32 %v3622_v34, %v4738_v54 }
 0x357   : > { %3877 = vtanh.f32 %v2603_v13  ;;  %v2604_v36 = vadd.f32 %v3623_v63, %v4738_v54 }
 0x358   : > { %v3868_v38 = vpop.eup %3867  ;;  %3879 = vtanh.f32 %v2606_v2 }
 0x359   : > { %v3870_v46 = vpop.eup %3869  ;;  %v2732_v9 = vsel %vm2665_vm3, %v3868_v38, %v2601_v14  ;;  %3881 = vtanh.f32 %v2604_v36  ;;  %v3546_v10 = vpop.f32.mrb[36].mxu1 }
 0x35a   : > { %v3872_v18 = vpop.eup %3871  ;;  %2797 = vst.msk [vmem:[%s4762_s9 + $0x10] sm:$0xff] %vm2794_vm4, %v2732_v9  ;;  %v2730_v19 = vsel %vm2665_vm3, %v3870_v46, %v2599_v56  ;;  %v3624_v22 = vadd.f32 %v3546_v10, %v4642_v27  ;;  %v2305_v25 = vpop.f32.mrb[37].mxu1 }
 0x35b   : > { %v3874_v26 = vpop.eup %3873  ;;  %2795 = vst.msk [vmem:[%s4762_s9] sm:$0xff] %vm2794_vm4, %v2730_v19  ;;  %v2733_v53 = vsel %vm2665_vm3, %v3872_v18, %v2602_v0  ;;  %v3625_v15 = vadd.f32 %v2305_v25, %v4644_v44  ;;  %v3547_v16 = vpop.f32.mrb[38].mxu1 }
 0x35c   : > { %2798 = vst.msk [vmem:[%s4762_s9 + $0x18] sm:$0xff] %vm2794_vm4, %v2733_v53  ;;  %v2731_v50 = vsel %vm2665_vm3, %v3874_v26, %v2600_v1  ;;  %v2609_v51 = vadd.f32 %v3624_v22, %v4738_v54  ;;  %v3626_v14 = vadd.f32 %v3547_v16, %v4646_v28  ;;  %v2308_v27 = vpop.f32.mrb[39].mxu1 }
 0x35d   : > { %2796 = vst.msk [vmem:[%s4762_s9 + $0x8] sm:$0xff] %vm2794_vm4, %v2731_v50  ;;  %v2607_v17 = vadd.f32 %v3625_v15, %v4738_v54  ;;  %v3627_v55 = vadd.f32 %v2308_v27, %v4648_v29 }
 0x35e   : > { %3883 = vtanh.f32 %v2609_v51  ;;  %v2610_v44 = vadd.f32 %v3626_v14, %v4738_v54 }
 0x35f   : > { %3885 = vtanh.f32 %v2607_v17  ;;  %v2608_v56 = vadd.f32 %v3627_v55, %v4738_v54 }
 0x360   : > { %v3876_v23 = vpop.eup %3875  ;;  %3887 = vtanh.f32 %v2610_v44 }
 0x361   : > { %v3878_v24 = vpop.eup %3877  ;;  %v2736_v28 = vsel %vm2665_vm3, %v3876_v23, %v2605_v41  ;;  %3889 = vtanh.f32 %v2608_v56  ;;  %v3550_v0 = vpop.f32.mrb[40].mxu1 }
 0x362   : > { %v3880_v1 = vpop.eup %3879  ;;  %2801 = vst.msk [vmem:[%s4762_s9 + $0x30] sm:$0xff] %vm2794_vm4, %v2736_v28  ;;  %v2734_v29 = vsel %vm2665_vm3, %v3878_v24, %v2603_v13  ;;  %v3628_v32 = vadd.f32 %v3550_v0, %v4652_v30  ;;  %v2321_v11 = vpop.f32.mrb[41].mxu1 }
 0x363   : > { %v3882_v12 = vpop.eup %3881  ;;  %2799 = vst.msk [vmem:[%s4762_s9 + $0x20] sm:$0xff] %vm2794_vm4, %v2734_v29  ;;  %v2737_v59 = vsel %vm2665_vm3, %v3880_v1, %v2606_v2  ;;  %v3629_v62 = vadd.f32 %v2321_v11, %v4654_v31  ;;  %v3551_v41 = vpop.f32.mrb[42].mxu1 }
 0x364   : > { %2802 = vst.msk [vmem:[%s4762_s9 + $0x38] sm:$0xff] %vm2794_vm4, %v2737_v59  ;;  %v2735_v34 = vsel %vm2665_vm3, %v3882_v12, %v2604_v36  ;;  %v2613_v43 = vadd.f32 %v3628_v32, %v4738_v54  ;;  %v3630_v13 = vadd.f32 %v3551_v41, %v4656_v35  ;;  %v2324_v30 = vpop.f32.mrb[43].mxu1 }
 0x365   : > { %2800 = vst.msk [vmem:[%s4762_s9 + $0x28] sm:$0xff] %vm2794_vm4, %v2735_v34  ;;  %v2611_v63 = vadd.f32 %v3629_v62, %v4738_v54  ;;  %v3631_v2 = vadd.f32 %v2324_v30, %v4658_v48 }
 0x366   : > { %3891 = vtanh.f32 %v2613_v43  ;;  %v2614_v31 = vadd.f32 %v3630_v13, %v4738_v54 }
 0x367   : > { %3893 = vtanh.f32 %v2611_v63  ;;  %v2612_v38 = vadd.f32 %v3631_v2, %v4738_v54 }
 0x368   : > { %v3884_v36 = vpop.eup %3883  ;;  %3895 = vtanh.f32 %v2614_v31 }
 0x369   : > { %v3886_v46 = vpop.eup %3885  ;;  %v2740_v35 = vsel %vm2665_vm3, %v3884_v36, %v2609_v51  ;;  %3897 = vtanh.f32 %v2612_v38  ;;  %v3554_v9 = vpop.f32.mrb[44].mxu1 }
 0x36a   : > { %v3888_v10 = vpop.eup %3887  ;;  %2805 = vst.msk [vmem:[%s4762_s9 + $0x50] sm:$0xff] %vm2794_vm4, %v2740_v35  ;;  %v2738_v48 = vsel %vm2665_vm3, %v3886_v46, %v2607_v17  ;;  %v3632_v18 = vadd.f32 %v3554_v9, %v4662_v49  ;;  %v2337_v19 = vpop.f32.mrb[45].mxu1 }
 0x36b   : > { %v3890_v22 = vpop.eup %3889  ;;  %2803 = vst.msk [vmem:[%s4762_s9 + $0x40] sm:$0xff] %vm2794_vm4, %v2738_v48  ;;  %v2741_v25 = vsel %vm2665_vm3, %v3888_v10, %v2610_v44  ;;  %v3633_v26 = vadd.f32 %v2337_v19, %v4664_v42  ;;  %v3555_v53 = vpop.f32.mrb[46].mxu1 }
 0x36c   : > { %2806 = vst.msk [vmem:[%s4762_s9 + $0x58] sm:$0xff] %vm2794_vm4, %v2741_v25  ;;  %v2739_v15 = vsel %vm2665_vm3, %v3890_v22, %v2608_v56  ;;  %v2617_v16 = vadd.f32 %v3632_v18, %v4738_v54  ;;  %v3634_v50 = vadd.f32 %v3555_v53, %v4666_v47  ;;  %v2340_v49 = vpop.f32.mrb[47].mxu1 }
 0x36d   : > { %2804 = vst.msk [vmem:[%s4762_s9 + $0x48] sm:$0xff] %vm2794_vm4, %v2739_v15  ;;  %v2615_v51 = vadd.f32 %v3633_v26, %v4738_v54  ;;  %v3635_v14 = vadd.f32 %v2340_v49, %v4668_v52 }
 0x36e   : > { %3899 = vtanh.f32 %v2617_v16  ;;  %v2618_v42 = vadd.f32 %v3634_v50, %v4738_v54 }
 0x36f   : > { %3901 = vtanh.f32 %v2615_v51  ;;  %v2616_v27 = vadd.f32 %v3635_v14, %v4738_v54 }
 0x370   : > { %v3892_v17 = vpop.eup %3891  ;;  %3903 = vtanh.f32 %v2618_v42 }
 0x371   : > { %v3894_v55 = vpop.eup %3893  ;;  %v2744_v47 = vsel %vm2665_vm3, %v3892_v17, %v2613_v43  ;;  %3905 = vtanh.f32 %v2616_v27  ;;  %v3558_v44 = vpop.f32.mrb[48].mxu1 }
 0x372   : > { %v3896_v56 = vpop.eup %3895  ;;  %2809 = vst.msk [vmem:[%s4762_s9 + $0x70] sm:$0xff] %vm2794_vm4, %v2744_v47  ;;  %v2742_v52 = vsel %vm2665_vm3, %v3894_v55, %v2611_v63  ;;  %v3636_v23 = vadd.f32 %v3558_v44, %v4672_v57  ;;  %v2353_v24 = vpop.f32.mrb[49].mxu1 }
 0x373   : > { %v3898_v28 = vpop.eup %3897  ;;  %2807 = vst.msk [vmem:[%s4762_s9 + $0x60] sm:$0xff] %vm2794_vm4, %v2742_v52  ;;  %v2745_v0 = vsel %vm2665_vm3, %v3896_v56, %v2614_v31  ;;  %v3637_v1 = vadd.f32 %v2353_v24, %v4674_v58  ;;  %v3559_v29 = vpop.f32.mrb[50].mxu1 }
 0x374   : > { %2810 = vst.msk [vmem:[%s4762_s9 + $0x78] sm:$0xff] %vm2794_vm4, %v2745_v0  ;;  %v2743_v32 = vsel %vm2665_vm3, %v3898_v28, %v2612_v38  ;;  %v2621_v11 = vadd.f32 %v3636_v23, %v4738_v54  ;;  %v3638_v12 = vadd.f32 %v3559_v29, %v4676_v45  ;;  %v2356_v57 = vpop.f32.mrb[51].mxu1 }
 0x375   : > { %2808 = vst.msk [vmem:[%s4762_s9 + $0x68] sm:$0xff] %vm2794_vm4, %v2743_v32  ;;  %v2619_v59 = vadd.f32 %v3637_v1, %v4738_v54  ;;  %v3639_v62 = vadd.f32 %v2356_v57, %v4678_v39 }
 0x376   : > { %3907 = vtanh.f32 %v2621_v11  ;;  %v2622_v58 = vadd.f32 %v3638_v12, %v4738_v54 }
 0x377   : > { %3909 = vtanh.f32 %v2619_v59  ;;  %v2620_v41 = vadd.f32 %v3639_v62, %v4738_v54 }
 0x378   : > { %v3900_v34 = vpop.eup %3899  ;;  %3911 = vtanh.f32 %v2622_v58 }
 0x379   : > { %v3902_v43 = vpop.eup %3901  ;;  %v2748_v45 = vsel %vm2665_vm3, %v3900_v34, %v2617_v16  ;;  %3913 = vtanh.f32 %v2620_v41  ;;  %v3562_v13 = vpop.f32.mrb[52].mxu1 }
 0x37a   : > { %v3904_v30 = vpop.eup %3903  ;;  %2813 = vst.msk [vmem:[%s4762_s9 + $0x90] sm:$0xff] %vm2794_vm4, %v2748_v45  ;;  %v2746_v39 = vsel %vm2665_vm3, %v3902_v43, %v2615_v51  ;;  %v3640_v63 = vadd.f32 %v3562_v13, %v4682_v3  ;;  %v2369_v2 = vpop.f32.mrb[53].mxu1 }
 0x37b   : > { %v3906_v31 = vpop.eup %3905  ;;  %2811 = vst.msk [vmem:[%s4762_s9 + $0x80] sm:$0xff] %vm2794_vm4, %v2746_v39  ;;  %v2749_v38 = vsel %vm2665_vm3, %v3904_v30, %v2618_v42  ;;  %v3641_v36 = vadd.f32 %v2369_v2, %v4684_v4  ;;  %v3563_v46 = vpop.f32.mrb[54].mxu1 }
 0x37c   : > { %2814 = vst.msk [vmem:[%s4762_s9 + $0x98] sm:$0xff] %vm2794_vm4, %v2749_v38  ;;  %v2747_v35 = vsel %vm2665_vm3, %v3906_v31, %v2616_v27  ;;  %v2625_v9 = vadd.f32 %v3640_v63, %v4738_v54  ;;  %v3642_v10 = vadd.f32 %v3563_v46, %v4686_v5  ;;  %v2372_v3 = vpop.f32.mrb[55].mxu1 }
 0x37d   : > { %2812 = vst.msk [vmem:[%s4762_s9 + $0x88] sm:$0xff] %vm2794_vm4, %v2747_v35  ;;  %v2623_v48 = vadd.f32 %v3641_v36, %v4738_v54  ;;  %v3643_v18 = vadd.f32 %v2372_v3, %v4688_v6 }
 0x37e   : > { %3915 = vtanh.f32 %v2625_v9  ;;  %v2626_v4 = vadd.f32 %v3642_v10, %v4738_v54 }
 0x37f   : > { %3917 = vtanh.f32 %v2623_v48  ;;  %v2624_v19 = vadd.f32 %v3643_v18, %v4738_v54 }
 0x380   : > { %v3908_v22 = vpop.eup %3907  ;;  %3919 = vtanh.f32 %v2626_v4 }
 0x381   : > { %v3910_v25 = vpop.eup %3909  ;;  %v2752_v5 = vsel %vm2665_vm3, %v3908_v22, %v2621_v11  ;;  %3921 = vtanh.f32 %v2624_v19  ;;  %v3566_v26 = vpop.f32.mrb[56].mxu1 }
 0x382   : > { %v3912_v53 = vpop.eup %3911  ;;  %2817 = vst.msk [vmem:[%s4762_s9 + $0xb0] sm:$0xff] %vm2794_vm4, %v2752_v5  ;;  %v2750_v6 = vsel %vm2665_vm3, %v3910_v25, %v2619_v59  ;;  %v3644_v15 = vadd.f32 %v3566_v26, %v4692_v61  ;;  %v2385_v16 = vpop.f32.mrb[57].mxu1 }
 0x383   : > { %v3914_v50 = vpop.eup %3913  ;;  %2815 = vst.msk [vmem:[%s4762_s9 + $0xa0] sm:$0xff] %vm2794_vm4, %v2750_v6  ;;  %v2753_v49 = vsel %vm2665_vm3, %v3912_v53, %v2622_v58  ;;  %v3645_v51 = vadd.f32 %v2385_v16, %v4694_v37  ;;  %v3567_v14 = vpop.f32.mrb[58].mxu1 }
 0x384   : > { %2818 = vst.msk [vmem:[%s4762_s9 + $0xb8] sm:$0xff] %vm2794_vm4, %v2753_v49  ;;  %v2751_v42 = vsel %vm2665_vm3, %v3914_v50, %v2620_v41  ;;  %v2629_v27 = vadd.f32 %v3644_v15, %v4738_v54  ;;  %v3646_v17 = vadd.f32 %v3567_v14, %v4696_v40  ;;  %v2388_v61 = vpop.f32.mrb[59].mxu1 }
 0x385   : > { %2816 = vst.msk [vmem:[%s4762_s9 + $0xa8] sm:$0xff] %vm2794_vm4, %v2751_v42  ;;  %v2627_v55 = vadd.f32 %v3645_v51, %v4738_v54  ;;  %v3647_v47 = vadd.f32 %v2388_v61, %v4698_v60 }
 0x386   : > { %3923 = vtanh.f32 %v2629_v27  ;;  %v2630_v37 = vadd.f32 %v3646_v17, %v4738_v54 }
 0x387   : > { %3925 = vtanh.f32 %v2627_v55  ;;  %v2628_v44 = vadd.f32 %v3647_v47, %v4738_v54 }
 0x388   : > { %v3916_v56 = vpop.eup %3915  ;;  %3927 = vtanh.f32 %v2630_v37 }
 0x389   : > { %v3918_v52 = vpop.eup %3917  ;;  %v2756_v40 = vsel %vm2665_vm3, %v3916_v56, %v2625_v9  ;;  %3929 = vtanh.f32 %v2628_v44  ;;  %v3570_v23 = vpop.f32.mrb[60].mxu1 }
 0x38a   : > { %v3920_v24 = vpop.eup %3919  ;;  %2821 = vst.msk [vmem:[%s4762_s9 + $0xd0] sm:$0xff] %vm2794_vm4, %v2756_v40  ;;  %v2754_v60 = vsel %vm2665_vm3, %v3918_v52, %v2623_v48  ;;  %v3648_v28 = vadd.f32 %v3570_v23, %v4702_v21  ;;  %v2401_v0 = vpop.f32.mrb[61].mxu1 }
 0x38b   : > { %v3922_v1 = vpop.eup %3921  ;;  %2819 = vst.msk [vmem:[%s4762_s9 + $0xc0] sm:$0xff] %vm2794_vm4, %v2754_v60  ;;  %v2757_v29 = vsel %vm2665_vm3, %v3920_v24, %v2626_v4  ;;  %v3649_v32 = vadd.f32 %v2401_v0, %v4704_v7  ;;  %v3571_v11 = vpop.f32.mrb[62].mxu1 }
 0x38c   : > { %2822 = vst.msk [vmem:[%s4762_s9 + $0xd8] sm:$0xff] %vm2794_vm4, %v2757_v29  ;;  %v2755_v12 = vsel %vm2665_vm3, %v3922_v1, %v2624_v19  ;;  %v2633_v57 = vadd.f32 %v3648_v28, %v4738_v54  ;;  %v3650_v59 = vadd.f32 %v3571_v11, %v4706_v8  ;;  %v2404_v21 = vpop.f32.mrb[63].mxu1 }
 0x38d   : > { %2820 = vst.msk [vmem:[%s4762_s9 + $0xc8] sm:$0xff] %vm2794_vm4, %v2755_v12  ;;  %v2631_v62 = vadd.f32 %v3649_v32, %v4738_v54  ;;  %v3651_v58 = vadd.f32 %v2404_v21, %v4708_v20 }
 0x38e   : > { %3931 = vtanh.f32 %v2633_v57  ;;  %v2634_v7 = vadd.f32 %v3650_v59, %v4738_v54 }
 0x38f   : > { %3933 = vtanh.f32 %v2631_v62  ;;  %v2632_v41 = vadd.f32 %v3651_v58, %v4738_v54 }
 0x390   : > { %v3924_v34 = vpop.eup %3923  ;;  %3935 = vtanh.f32 %v2634_v7 }
 0x391   : > { %v3926_v43 = vpop.eup %3925  ;;  %v2760_v8 = vsel %vm2665_vm3, %v3924_v34, %v2629_v27  ;;  %3937 = vtanh.f32 %v2632_v41  ;;  %v3574_v45 = vpop.f32.mrb[0].mxu1 }
 0x392   : > { %v3928_v13 = vpop.eup %3927  ;;  %2825 = vst.msk [vmem:[%s4762_s9 + $0xf0] sm:$0xff] %vm2794_vm4, %v2760_v8  ;;  %v2758_v20 = vsel %vm2665_vm3, %v3926_v43, %v2627_v55  ;;  %v2637_v30 = vadd.f32 %v3574_v45, %v4738_v54  ;;  %v2417_v39 = vpop.f32.mrb[1].mxu1 }
 0x393   : > { %v3930_v63 = vpop.eup %3929  ;;  %2823 = vst.msk [vmem:[%s4762_s9 + $0xe0] sm:$0xff] %vm2794_vm4, %v2758_v20  ;;  %v2761_v2 = vsel %vm2665_vm3, %v3928_v13, %v2630_v37  ;;  %v2635_v31 = vadd.f32 %v4738_v54, %v2417_v39  ;;  %v3575_v38 = vpop.f32.mrb[2].mxu1 }
 0x394   : > { %2826 = vst.msk [vmem:[%s4762_s9 + $0xf8] sm:$0xff] %vm2794_vm4, %v2761_v2  ;;  %v2759_v36 = vsel %vm2665_vm3, %v3930_v63, %v2628_v44  ;;  %3939 = vtanh.f32 %v2637_v30  ;;  %v2638_v46 = vadd.f32 %v3575_v38, %v4738_v54  ;;  %v2420_v35 = vpop.f32.mrb[3].mxu1 }
 0x395   : > { %2824 = vst.msk [vmem:[%s4762_s9 + $0xe8] sm:$0xff] %vm2794_vm4, %v2759_v36  ;;  %3941 = vtanh.f32 %v2635_v31  ;;  %v2636_v9 = vadd.f32 %v4738_v54, %v2420_v35 }
 0x396   : > { %3943 = vtanh.f32 %v2638_v46 }
 0x397   : > { %3945 = vtanh.f32 %v2636_v9 }
 0x398   : > { %v3932_v10 = vpop.eup %3931 }
 0x399   : > { %v3934_v3 = vpop.eup %3933  ;;  %v2764_v48 = vsel %vm2665_vm3, %v3932_v10, %v2633_v57  ;;  %v3578_v18 = vpop.f32.mrb[4].mxu1 }
 0x39a   : > { %v3936_v4 = vpop.eup %3935  ;;  %2829 = vst.msk [vmem:[%s4762_s9 + $0x110] sm:$0xff] %vm2794_vm4, %v2764_v48  ;;  %v2762_v19 = vsel %vm2665_vm3, %v3934_v3, %v2631_v62  ;;  %v2641_v22 = vadd.f32 %v3578_v18, %v4738_v54  ;;  %v2433_v25 = vpop.f32.mrb[5].mxu1 }
 0x39b   : > { %v3938_v5 = vpop.eup %3937  ;;  %2827 = vst.msk [vmem:[%s4762_s9 + $0x100] sm:$0xff] %vm2794_vm4, %v2762_v19  ;;  %v2765_v26 = vsel %vm2665_vm3, %v3936_v4, %v2634_v7  ;;  %v2639_v53 = vadd.f32 %v4738_v54, %v2433_v25  ;;  %v3579_v6 = vpop.f32.mrb[6].mxu1 }
 0x39c   : > { %2830 = vst.msk [vmem:[%s4762_s9 + $0x118] sm:$0xff] %vm2794_vm4, %v2765_v26  ;;  %v2763_v15 = vsel %vm2665_vm3, %v3938_v5, %v2632_v41  ;;  %3947 = vtanh.f32 %v2641_v22  ;;  %v2642_v16 = vadd.f32 %v3579_v6, %v4738_v54  ;;  %v2436_v50 = vpop.f32.mrb[7].mxu1 }
 0x39d   : > { %2828 = vst.msk [vmem:[%s4762_s9 + $0x108] sm:$0xff] %vm2794_vm4, %v2763_v15  ;;  %3949 = vtanh.f32 %v2639_v53  ;;  %v2640_v49 = vadd.f32 %v4738_v54, %v2436_v50 }
 0x39e   : > { %v3940_v51 = vpop.eup %3939  ;;  %3951 = vtanh.f32 %v2642_v16 }
 0x39f   : > { %v3942_v14 = vpop.eup %3941  ;;  %v2768_v42 = vsel %vm2665_vm3, %v3940_v51, %v2637_v30  ;;  %3953 = vtanh.f32 %v2640_v49 }
 0x3a0   : > { %v3944_v27 = vpop.eup %3943  ;;  %2833 = vst.msk [vmem:[%s4762_s9 + $0x130] sm:$0xff] %vm2794_vm4, %v2768_v42  ;;  %v2766_v17 = vsel %vm2665_vm3, %v3942_v14, %v2635_v31 }
 0x3a1   : > { %v3946_v61 = vpop.eup %3945  ;;  %2831 = vst.msk [vmem:[%s4762_s9 + $0x120] sm:$0xff] %vm2794_vm4, %v2766_v17  ;;  %v2769_v55 = vsel %vm2665_vm3, %v3944_v27, %v2638_v46  ;;  %v3582_v47 = vpop.f32.mrb[8].mxu1 }
 0x3a2   : > { %2834 = vst.msk [vmem:[%s4762_s9 + $0x138] sm:$0xff] %vm2794_vm4, %v2769_v55  ;;  %v2767_v37 = vsel %vm2665_vm3, %v3946_v61, %v2636_v9  ;;  %v2645_v44 = vadd.f32 %v3582_v47, %v4738_v54  ;;  %v2449_v56 = vpop.f32.mrb[9].mxu1 }
 0x3a3   : > { %2832 = vst.msk [vmem:[%s4762_s9 + $0x128] sm:$0xff] %vm2794_vm4, %v2767_v37  ;;  %v2643_v52 = vadd.f32 %v4738_v54, %v2449_v56  ;;  %v3583_v40 = vpop.f32.mrb[10].mxu1 }
 0x3a4   : > { %3955 = vtanh.f32 %v2645_v44  ;;  %v2646_v23 = vadd.f32 %v3583_v40, %v4738_v54  ;;  %v2452_v24 = vpop.f32.mrb[11].mxu1 }
 0x3a5   : > { %3957 = vtanh.f32 %v2643_v52  ;;  %v2644_v60 = vadd.f32 %v4738_v54, %v2452_v24 }
 0x3a6   : > { %v3948_v28 = vpop.eup %3947  ;;  %3959 = vtanh.f32 %v2646_v23 }
 0x3a7   : > { %v3950_v0 = vpop.eup %3949  ;;  %v2772_v1 = vsel %vm2665_vm3, %v3948_v28, %v2641_v22  ;;  %3961 = vtanh.f32 %v2644_v60 }
 0x3a8   : > { %v3952_v29 = vpop.eup %3951  ;;  %2837 = vst.msk [vmem:[%s4762_s9 + $0x150] sm:$0xff] %vm2794_vm4, %v2772_v1  ;;  %v2770_v32 = vsel %vm2665_vm3, %v3950_v0, %v2639_v53 }
 0x3a9   : > { %v3954_v11 = vpop.eup %3953  ;;  %2835 = vst.msk [vmem:[%s4762_s9 + $0x140] sm:$0xff] %vm2794_vm4, %v2770_v32  ;;  %v2773_v12 = vsel %vm2665_vm3, %v3952_v29, %v2642_v16  ;;  %v3586_v57 = vpop.f32.mrb[12].mxu1 }
 0x3aa   : > { %2838 = vst.msk [vmem:[%s4762_s9 + $0x158] sm:$0xff] %vm2794_vm4, %v2773_v12  ;;  %v2771_v59 = vsel %vm2665_vm3, %v3954_v11, %v2640_v49  ;;  %v2649_v21 = vadd.f32 %v3586_v57, %v4738_v54  ;;  %v2465_v62 = vpop.f32.mrb[13].mxu1 }
 0x3ab   : > { %2836 = vst.msk [vmem:[%s4762_s9 + $0x148] sm:$0xff] %vm2794_vm4, %v2771_v59  ;;  %v2647_v58 = vadd.f32 %v4738_v54, %v2465_v62  ;;  %v3587_v7 = vpop.f32.mrb[14].mxu1 }
 0x3ac   : > { %3963 = vtanh.f32 %v2649_v21  ;;  %v2650_v41 = vadd.f32 %v3587_v7, %v4738_v54  ;;  %v2468_v34 = vpop.f32.mrb[15].mxu1 }
 0x3ad   : > { %3965 = vtanh.f32 %v2647_v58  ;;  %v2648_v43 = vadd.f32 %v4738_v54, %v2468_v34 }
 0x3ae   : > { %v3956_v8 = vpop.eup %3955  ;;  %3967 = vtanh.f32 %v2650_v41 }
 0x3af   : > { %v3958_v45 = vpop.eup %3957  ;;  %v2776_v13 = vsel %vm2665_vm3, %v3956_v8, %v2645_v44  ;;  %3969 = vtanh.f32 %v2648_v43 }
 0x3b0   : > { %v3960_v20 = vpop.eup %3959  ;;  %2841 = vst.msk [vmem:[%s4762_s9 + $0x170] sm:$0xff] %vm2794_vm4, %v2776_v13  ;;  %v2774_v30 = vsel %vm2665_vm3, %v3958_v45, %v2643_v52 }
 0x3b1   : > { %v3962_v39 = vpop.eup %3961  ;;  %2839 = vst.msk [vmem:[%s4762_s9 + $0x160] sm:$0xff] %vm2794_vm4, %v2774_v30  ;;  %v2777_v63 = vsel %vm2665_vm3, %v3960_v20, %v2646_v23  ;;  %v3590_v2 = vpop.f32.mrb[16].mxu1 }
 0x3b2   : > { %2842 = vst.msk [vmem:[%s4762_s9 + $0x178] sm:$0xff] %vm2794_vm4, %v2777_v63  ;;  %v2775_v31 = vsel %vm2665_vm3, %v3962_v39, %v2644_v60  ;;  %v2653_v38 = vadd.f32 %v3590_v2, %v4738_v54  ;;  %v2481_v36 = vpop.f32.mrb[17].mxu1 }
 0x3b3   : > { %2840 = vst.msk [vmem:[%s4762_s9 + $0x168] sm:$0xff] %vm2794_vm4, %v2775_v31  ;;  %v2651_v46 = vadd.f32 %v4738_v54, %v2481_v36  ;;  %v3591_v35 = vpop.f32.mrb[18].mxu1 }
 0x3b4   : > { %3971 = vtanh.f32 %v2653_v38  ;;  %v2654_v9 = vadd.f32 %v3591_v35, %v4738_v54  ;;  %v2484_v10 = vpop.f32.mrb[19].mxu1 }
 0x3b5   : > { %3973 = vtanh.f32 %v2651_v46  ;;  %v2652_v3 = vadd.f32 %v4738_v54, %v2484_v10 }
 0x3b6   : > { %v3964_v48 = vpop.eup %3963  ;;  %3975 = vtanh.f32 %v2654_v9 }
 0x3b7   : > { %v3966_v18 = vpop.eup %3965  ;;  %v2780_v4 = vsel %vm2665_vm3, %v3964_v48, %v2649_v21  ;;  %3977 = vtanh.f32 %v2652_v3 }
 0x3b8   : > { %v3968_v19 = vpop.eup %3967  ;;  %2845 = vst.msk [vmem:[%s4762_s9 + $0x190] sm:$0xff] %vm2794_vm4, %v2780_v4  ;;  %v2778_v22 = vsel %vm2665_vm3, %v3966_v18, %v2647_v58 }
 0x3b9   : > { %v3970_v25 = vpop.eup %3969  ;;  %2843 = vst.msk [vmem:[%s4762_s9 + $0x180] sm:$0xff] %vm2794_vm4, %v2778_v22  ;;  %v2781_v5 = vsel %vm2665_vm3, %v3968_v19, %v2650_v41  ;;  %v3594_v26 = vpop.f32.mrb[20].mxu1 }
 0x3ba   : > { %2846 = vst.msk [vmem:[%s4762_s9 + $0x198] sm:$0xff] %vm2794_vm4, %v2781_v5  ;;  %v2779_v53 = vsel %vm2665_vm3, %v3970_v25, %v2648_v43  ;;  %v2657_v6 = vadd.f32 %v3594_v26, %v4738_v54  ;;  %v2497_v15 = vpop.f32.mrb[21].mxu1 }
 0x3bb   : > { %2844 = vst.msk [vmem:[%s4762_s9 + $0x188] sm:$0xff] %vm2794_vm4, %v2779_v53  ;;  %v2655_v16 = vadd.f32 %v4738_v54, %v2497_v15  ;;  %v3595_v50 = vpop.f32.mrb[22].mxu1 }
 0x3bc   : > { %3979 = vtanh.f32 %v2657_v6  ;;  %v2658_v49 = vadd.f32 %v3595_v50, %v4738_v54  ;;  %v2500_v51 = vpop.f32.mrb[23].mxu1 }
 0x3bd   : > { %3981 = vtanh.f32 %v2655_v16  ;;  %v2656_v14 = vadd.f32 %v4738_v54, %v2500_v51 }
 0x3be   : > { %v3972_v42 = vpop.eup %3971  ;;  %3983 = vtanh.f32 %v2658_v49 }
 0x3bf   : > { %v3974_v27 = vpop.eup %3973  ;;  %v2784_v17 = vsel %vm2665_vm3, %v3972_v42, %v2653_v38  ;;  %3985 = vtanh.f32 %v2656_v14 }
 0x3c0   : > { %v3976_v61 = vpop.eup %3975  ;;  %2849 = vst.msk [vmem:[%s4762_s9 + $0x1b0] sm:$0xff] %vm2794_vm4, %v2784_v17  ;;  %v2782_v55 = vsel %vm2665_vm3, %v3974_v27, %v2651_v46 }
 0x3c1   : > { %v3978_v47 = vpop.eup %3977  ;;  %2847 = vst.msk [vmem:[%s4762_s9 + $0x1a0] sm:$0xff] %vm2794_vm4, %v2782_v55  ;;  %v2785_v37 = vsel %vm2665_vm3, %v3976_v61, %v2654_v9  ;;  %v3598_v44 = vpop.f32.mrb[24].mxu1 }
 0x3c2   : > { %2850 = vst.msk [vmem:[%s4762_s9 + $0x1b8] sm:$0xff] %vm2794_vm4, %v2785_v37  ;;  %v2783_v56 = vsel %vm2665_vm3, %v3978_v47, %v2652_v3  ;;  %v2661_v52 = vadd.f32 %v3598_v44, %v4738_v54  ;;  %v2513_v40 = vpop.f32.mrb[25].mxu1 }
 0x3c3   : > { %2848 = vst.msk [vmem:[%s4762_s9 + $0x1a8] sm:$0xff] %vm2794_vm4, %v2783_v56  ;;  %v2659_v23 = vadd.f32 %v4738_v54, %v2513_v40  ;;  %v3599_v24 = vpop.f32.mrb[26].mxu1 }
 0x3c4   : > { %3987 = vtanh.f32 %v2661_v52  ;;  %v2662_v60 = vadd.f32 %v3599_v24, %v4738_v54  ;;  %v2516_v28 = vpop.f32.mrb[27].mxu1 }
 0x3c5   : > { %3989 = vtanh.f32 %v2659_v23  ;;  %v2660_v0 = vadd.f32 %v4738_v54, %v2516_v28 }
 0x3c6   : > { %v3980_v1 = vpop.eup %3979  ;;  %3991 = vtanh.f32 %v2662_v60 }
 0x3c7   : > { %v3982_v29 = vpop.eup %3981  ;;  %v2788_v32 = vsel %vm2665_vm3, %v3980_v1, %v2657_v6  ;;  %3993 = vtanh.f32 %v2660_v0 }
 0x3c8   : > { %v3984_v11 = vpop.eup %3983  ;;  %2853 = vst.msk [vmem:[%s4762_s9 + $0x1d0] sm:$0xff] %vm2794_vm4, %v2788_v32  ;;  %v2786_v12 = vsel %vm2665_vm3, %v3982_v29, %v2655_v16 }
 0x3c9   : > { %v3986_v57 = vpop.eup %3985  ;;  %2851 = vst.msk [vmem:[%s4762_s9 + $0x1c0] sm:$0xff] %vm2794_vm4, %v2786_v12  ;;  %v2789_v54 = vsel %vm2665_vm3, %v3984_v11, %v2658_v49 }
 0x3ca   : > { %2854 = vst.msk [vmem:[%s4762_s9 + $0x1d8] sm:$0xff] %vm2794_vm4, %v2789_v54  ;;  %v2787_v59 = vsel %vm2665_vm3, %v3986_v57, %v2656_v14 }
 0x3cb   : > { %2852 = vst.msk [vmem:[%s4762_s9 + $0x1c8] sm:$0xff] %vm2794_vm4, %v2787_v59 }
 0x3ce   : > { %v3988_v21 = vpop.eup %3987 }
 0x3cf   : > { %v3990_v62 = vpop.eup %3989  ;;  %v2792_v58 = vsel %vm2665_vm3, %v3988_v21, %v2661_v52 }
 0x3d0   : > { %v3992_v7 = vpop.eup %3991  ;;  %2857 = vst.msk [vmem:[%s4762_s9 + $0x1f0] sm:$0xff] %vm2794_vm4, %v2792_v58  ;;  %v2790_v41 = vsel %vm2665_vm3, %v3990_v62, %v2659_v23 }
 0x3d1   : > { %v3994_v34 = vpop.eup %3993  ;;  %2855 = vst.msk [vmem:[%s4762_s9 + $0x1e0] sm:$0xff] %vm2794_vm4, %v2790_v41  ;;  %v2793_v43 = vsel %vm2665_vm3, %v3992_v7, %v2662_v60 }
 0x3d2   : > { %2858 = vst.msk [vmem:[%s4762_s9 + $0x1f8] sm:$0xff] %vm2794_vm4, %v2793_v43  ;;  %v2791_v8 = vsel %vm2665_vm3, %v3994_v34, %v2660_v0 }
 0x3d3   : > { %2856 = vst.msk [vmem:[%s4762_s9 + $0x1e8] sm:$0xff] %vm2794_vm4, %v2791_v8 }
 0x3d4 PF: > { %s17_s24 = sadd.s32 1, %s4001_s24  }
 0x3d5   : > { %p14_p4 = scmp.ge.s32.totalorder %s17_s24, 4  }
 0x3d7   :  { %16 = sbr.rel (!%p14_p4) target bundleno = 1 (0x1), region = 78 }

</bundles_post_ra>
